<compile_context>
chip_gen: v5e
topology: v5e:2x2
jax: 0.10.0
libtpu: 0.0.40
codegen_flags: <defaults>
</compile_context>

<pallas_src>
import functools

import jax
import jax.numpy as jnp
from jax import lax
from jax.experimental import pallas as pl
from jax.experimental.pallas import tpu as pltpu


def _round_up(x, m):
    return ((x + m - 1) // m) * m


def _tpu_defaults():
    """(tn_target, vmem_cap_bytes, prefer_multi_out_tiles) per TPU generation."""
    kind = ""
    try:
        kind = jax.devices()[0].device_kind.lower()
    except Exception:
        pass
    if "v6" in kind:                                     # v6e: 1 TC, 128 MiB VMEM
        return 768, 96 * 1024 * 1024, False
    if "v7" in kind or "tpu7" in kind or "7x" in kind:   # v7x: 2 TC, 64 MiB VMEM
        return 512, 48 * 1024 * 1024, True
    if "v5" in kind and ("lite" in kind or "v5e" in kind):
        return 256, 96 * 1024 * 1024, False              # v5e: 1 TC, 128 MiB VMEM
    return 256, 48 * 1024 * 1024, True                   # unknown: conservative


def _choose_tm(M, dtype):
    """Row tile: dtype-sublane-granular, large, but without excessive padding."""
    isz = jnp.dtype(dtype).itemsize
    gran = {1: 32, 2: 16}.get(isz, 8)
    cands = [t for t in (8, 16, 32, 64, 128, 256) if t >= gran]
    mps = {t: _round_up(max(M, 1), t) for t in cands}
    mp_min = min(mps.values())
    tm = max(t for t in cands if mps[t] <= mp_min * 1.3 + 1e-9)
    return tm, mps[tm], gran


def _choose_tn(OUT, tn_target, prefer_multi):
    """OUT tile: multiple of 128 (lane-dense output stores), minimal OUT padding;
    on megacore parts prefer >=2 OUT tiles so both TensorCores get work."""
    if OUT <= 128:
        return OUT
    hi = min(max(tn_target, 128), _round_up(OUT, 128))
    best = None
    for t in range(128, hi + 1, 128):
        pad = _round_up(OUT, t)
        multi_pen = (0 if pad // t >= 2 else 1) if prefer_multi else 0
        key = (pad, multi_pen, -t)
        if best is None or key < best[0]:
            best = (key, t)
    return best[1]


def _vmem_estimate(tm, tn, IN, rank, srank, isz, chunk, single_buf):
    nb = 1 if single_buf else 2
    b = 2 * tm * IN * isz                      # x rows (double-buffered, per-step)
    b += 2 * tm * tn * isz                     # output tile (double-buffered)
    b += nb * tn * IN * isz                    # weight tile
    b += nb * (rank * IN + tn * rank + srank * IN + tn * srank + tn) * isz
    b += tn * IN * isz                         # persistent W_scaled scratch
    b += 3 * tn * chunk * 4                    # f32 temporaries in the build
    b += tm * tn * 4                           # f32 accumulator
    return int(b * 1.3)                        # headroom for compiler internals


def _lora_linear_kernel(x_ref, w_ref, la_ref, lb_ref, ma_ref, mb_ref, b_ref,
                        o_ref, w_scaled_ref, *, inv_rank, inv_scaling_rank,
                        fold_delta, build_chunk):
    tn, IN = w_ref.shape
    srank = ma_ref.shape[0]

    # ---- build the fused weight tile once per OUT tile (row tile == 0) ----
    @pl.when(pl.program_id(1) == 0)
    def _build():
        mb = mb_ref[...].astype(jnp.float32) * inv_scaling_rank       # (tn, srank)
        if fold_delta:
            lb = lb_ref[...].astype(jnp.float32) * inv_rank           # (tn, rank)
        for c0 in range(0, IN, build_chunk):                          # static loop
            c1 = min(c0 + build_chunk, IN)
            ma_c = ma_ref[:, c0:c1].astype(jnp.float32)               # (srank, c)
            # VPU broadcast outer-product sum instead of a K=srank MXU matmul.
            scale = mb[:, 0:1] * ma_c[0:1, :]
            for k in range(1, srank):
                scale = scale + mb[:, k:k + 1] * ma_c[k:k + 1, :]
            wc = w_ref[:, c0:c1].astype(jnp.float32) * scale
            if fold_delta:
                # Fold (lora_b @ lora_a)/rank into the cached weight: done once
                # per OUT tile instead of two per-row-tile matmuls.
                wc = wc + jnp.dot(lb, la_ref[:, c0:c1].astype(jnp.float32),
                                  preferred_element_type=jnp.float32)
            w_scaled_ref[:, c0:c1] = wc.astype(w_scaled_ref.dtype)

    x = x_ref[...]                                                    # (tm, IN)

    # ---- main matmul: contract IN of x with IN of the (tn, IN) weight tile ----
    acc = lax.dot_general(
        x, w_scaled_ref[...],
        dimension_numbers=(((1,), (1,)), ((), ())),
        preferred_element_type=jnp.float32)                           # (tm, tn)

    if not fold_delta:
        # Tiny-M path: decomposed low-rank delta  ((x @ la.T) @ lb.T) / rank.
        xa = lax.dot_general(
            x, la_ref[...],
            dimension_numbers=(((1,), (1,)), ((), ())),
            preferred_element_type=jnp.float32)                       # (tm, rank)
        acc = acc + lax.dot_general(
            xa * inv_rank, lb_ref[...].astype(jnp.float32),
            dimension_numbers=(((1,), (1,)), ((), ())),
            preferred_element_type=jnp.float32)                       # (tm, tn)

    acc = acc + b_ref[...].astype(jnp.float32)
    o_ref[...] = acc.astype(o_ref.dtype)


def lora_linear(x, weight, bias, lora_a, lora_b, multi_lora_a, multi_lora_b,
                *, rank, scaling_rank):
    assert rank > 0 and scaling_rank > 0, "kernel implements the general branch"
    B, S, IN = x.shape
    OUT, _ = weight.shape
    M = B * S
    dt = x.dtype
    isz = jnp.dtype(dt).itemsize

    tn_target, vmem_cap, prefer_multi = _tpu_defaults()
    tm, Mp, gran = _choose_tm(M, dt)
    tn = _choose_tn(OUT, tn_target, prefer_multi)
    build_chunk = min(IN, 2048)

    # Shrink tiles until the generation-aware VMEM budget is met.
    while _vmem_estimate(tm, tn, IN, rank, scaling_rank, isz, build_chunk,
                         True) > vmem_cap:
        if tn > 128 and tn % 128 == 0:
            tn -= 128
        elif build_chunk > 512:
            build_chunk = max(512, build_chunk // 2)
        elif tm > gran:
            tm = max(gran, tm // 2)
            Mp = _round_up(M, tm)
        else:
            break

    OUT_pad = OUT if tn == OUT else _round_up(OUT, tn)
    n_out = OUT_pad // tn
    n_m = Mp // tm
    fold_delta = n_m >= 3    # many row tiles -> fold delta into cached weight

    # ---- host-side layout prep (pads only when actually needed) ----
    x2 = x.reshape(M, IN)
    if Mp != M:
        x2 = jnp.pad(x2, ((0, Mp - M), (0, 0)))
    w2, lb2, mb2 = weight, lora_b, multi_lora_b
    bias2 = bias.reshape(1, OUT)
    if OUT_pad != OUT:
        p = OUT_pad - OUT
        w2 = jnp.pad(w2, ((0, p), (0, 0)))
        lb2 = jnp.pad(lb2, ((0, p), (0, 0)))
        mb2 = jnp.pad(mb2, ((0, p), (0, 0)))
        bias2 = jnp.pad(bias2, ((0, 0), (0, p)))

    est = _vmem_estimate(tm, tn, IN, rank, scaling_rank, isz, build_chunk, True)
    vmem_limit = int(min(vmem_cap, max(est, 32 * 1024 * 1024)))

    flops = 2.0 * Mp * OUT_pad * IN
    flops += 2.0 * rank * (OUT_pad * IN if fold_delta else Mp * (IN + OUT_pad))
    bytes_acc = (n_out * Mp * IN + OUT_pad * IN + Mp * OUT_pad) * isz
    try:
        cost = pl.CostEstimate(flops=int(flops), transcendentals=0,
                               bytes_accessed=int(bytes_acc))
    except Exception:
        cost = None

    kernel = functools.partial(
        _lora_linear_kernel,
        inv_rank=1.0 / float(rank),
        inv_scaling_rank=1.0 / float(scaling_rank),
        fold_delta=fold_delta,
        build_chunk=build_chunk)

    def _specs(single_buf):
        # Per-OUT-tile constants only change at o boundaries -> single-buffer
        # them (big VMEM saving; enables large tn).
        def cspec(shape, imap):
            if single_buf:
                try:
                    return pl.BlockSpec(shape, imap, pipeline_mode=pl.Buffered(1))
                except Exception:
                    return pl.BlockSpec(shape, imap)
            return pl.BlockSpec(shape, imap)
        return [
            pl.BlockSpec((tm, IN), lambda o, m: (m, 0)),          # x rows (per-step)
            cspec((tn, IN), lambda o, m: (o, 0)),                 # weight tile
            cspec((rank, IN), lambda o, m: (0, 0)),               # lora_a
            cspec((tn, rank), lambda o, m: (o, 0)),               # lora_b tile
            cspec((scaling_rank, IN), lambda o, m: (0, 0)),       # multi_lora_a
            cspec((tn, scaling_rank), lambda o, m: (o, 0)),       # multi_lora_b tile
            cspec((1, tn), lambda o, m: (0, o)),                  # bias tile
        ]

    def _run(single_buf):
        return pl.pallas_call(
            kernel,
            out_shape=jax.ShapeDtypeStruct((Mp, OUT_pad), dt),
            grid_spec=pltpu.PrefetchScalarGridSpec(
                num_scalar_prefetch=0,
                grid=(n_out, n_m),                       # OUT outer, rows inner
                in_specs=_specs(single_buf),
                out_specs=pl.BlockSpec((tm, tn), lambda o, m: (m, o)),
                scratch_shapes=[pltpu.VMEM((tn, IN), dt)],        # cached W_scaled
            ),
            compiler_params=pltpu.CompilerParams(
                dimension_semantics=("parallel", "arbitrary"),
                vmem_limit_bytes=vmem_limit),
            cost_estimate=cost,
        )(x2, w2, lora_a, lb2, multi_lora_a, mb2, bias2)

    try:
        out2 = _run(True)     # single-buffered per-OUT-tile constants
    except Exception:
        out2 = _run(False)    # safety fallback: default double-buffering

    return out2[:M, :OUT].reshape(B, S, OUT)


def lora_linear_ref(x, weight, bias, lora_a, lora_b, multi_lora_a,
                    multi_lora_b, *, rank, scaling_rank):
    w = weight * (multi_lora_b @ multi_lora_a) / scaling_rank
    w = w + (lora_b @ lora_a) / rank
    return jnp.einsum("bsi,oi->bso", x, w) + bias


def _make_params(key, in_features, out_features, rank, scaling_rank, init_scale):
    # Mirrors LoRALinear.__init__ with init_scale < 0 (all params random/active).
    k_w, k_b, k_la, k_lb, k_ma, k_mb = jax.random.split(key, 6)
    weight = jax.random.normal(k_w, (out_features, in_features), jnp.float32) * 0.05
    bias = jax.random.normal(k_b, (out_features,), jnp.float32) * 0.01
    lora_a = jax.random.normal(k_la, (rank, in_features), jnp.float32) * init_scale
    lora_b = jax.random.normal(k_lb, (out_features, rank), jnp.float32) * init_scale
    multi_lora_a = 1.0 + jax.random.normal(
        k_ma, (scaling_rank, in_features), jnp.float32) * init_scale
    multi_lora_b = 1.0 + jax.random.normal(
        k_mb, (out_features, scaling_rank), jnp.float32) * init_scale
    return weight, bias, lora_a, lora_b, multi_lora_a, multi_lora_b


if __name__ == "__main__":
    key = jax.random.PRNGKey(0)
    k0, k1, k2, k3, k4, k5 = jax.random.split(key, 6)
    rank, srank = 4, 2

    # ---- test 1: f32, lane-dense shapes, single row tile (decomposed path) ----
    batch, seq, in_f, out_f = 2, 8, 128, 256
    params = _make_params(k1, in_f, out_f, rank, srank, init_scale=-0.05)
    x = jax.random.normal(k0, (batch, seq, in_f), dtype=jnp.float32)
    out = jax.block_until_ready(lora_linear(x, *params, rank=rank, scaling_rank=srank))
    ref = lora_linear_ref(x, *params, rank=rank, scaling_rank=srank)
    assert out.shape == (batch, seq, out_f)
    assert jnp.allclose(out, ref, atol=2e-4, rtol=2e-4), "f32 mismatch vs reference"

    # ---- test 2: f32, ragged rows + small non-128 OUT (padding path) ----------
    b2, s2, in2, out2_f = 3, 5, 32, 64
    params2 = _make_params(k2, in2, out2_f, rank, srank, init_scale=-0.05)
    x2 = jax.random.normal(k3, (b2, s2, in2), dtype=jnp.float32)
    o2 = jax.block_until_ready(lora_linear(x2, *params2, rank=rank, scaling_rank=srank))
    r2 = lora_linear_ref(x2, *params2, rank=rank, scaling_rank=srank)
    assert o2.shape == (b2, s2, out2_f)
    assert jnp.allclose(o2, r2, atol=2e-4, rtol=2e-4), "ragged f32 mismatch vs reference"

    # ---- test 3: bf16 inputs -> bf16 MXU operands, f32 accumulation -----------
    x_bf = x.astype(jnp.bfloat16)
    params_bf = tuple(p.astype(jnp.bfloat16) for p in params)
    o_bf = jax.block_until_ready(
        lora_linear(x_bf, *params_bf, rank=rank, scaling_rank=srank))
    r_bf = lora_linear_ref(x_bf.astype(jnp.float32),
                           *[p.astype(jnp.float32) for p in params_bf],
                           rank=rank, scaling_rank=srank)
    assert jnp.allclose(o_bf.astype(jnp.float32), r_bf, atol=5e-2, rtol=5e-2), \
        "bf16 mismatch vs f32 reference"

    # ---- test 4: many row tiles -> folded low-rank delta path (f32) ----------
    b4, s4 = 2, 384                                   # M = 768 -> n_m >= 3
    x4 = jax.random.normal(k4, (b4, s4, in_f), dtype=jnp.float32)
    o4 = jax.block_until_ready(lora_linear(x4, *params, rank=rank, scaling_rank=srank))
    r4 = lora_linear_ref(x4, *params, rank=rank, scaling_rank=srank)
    assert jnp.allclose(o4, r4, atol=2e-4, rtol=2e-4), "folded f32 mismatch vs reference"

    # ---- test 5: folded path with bf16 inputs ---------------------------------
    x4_bf = x4.astype(jnp.bfloat16)
    o5 = jax.block_until_ready(
        lora_linear(x4_bf, *params_bf, rank=rank, scaling_rank=srank))
    r5 = lora_linear_ref(x4_bf.astype(jnp.float32),
                         *[p.astype(jnp.float32) for p in params_bf],
                         rank=rank, scaling_rank=srank)
    assert jnp.allclose(o5.astype(jnp.float32), r5, atol=5e-2, rtol=5e-2), \
        "folded bf16 mismatch vs f32 reference"

    # TODO(synk): the (scaling_rank==1 and rank==0) fast path with requires_grad
    # gating is a host-side training-time branch; only the general weight-fusion
    # branch is implemented as a kernel.
    print("KERNEL_OK")
</pallas_src>

<mosaic_0001>
module attributes {stable_mosaic.version = 11 : i64} {
  func.func @_lora_linear_kernel(%arg0: i32, %arg1: i32, %arg2: memref<16x128xf32, #tpu.memory_space<vmem>>, %arg3: memref<128x128xf32, #tpu.memory_space<vmem>>, %arg4: memref<4x128xf32, #tpu.memory_space<vmem>>, %arg5: memref<128x4xf32, #tpu.memory_space<vmem>>, %arg6: memref<2x128xf32, #tpu.memory_space<vmem>>, %arg7: memref<128x2xf32, #tpu.memory_space<vmem>>, %arg8: memref<1x128xf32, #tpu.memory_space<vmem>>, %arg9: memref<16x128xf32, #tpu.memory_space<vmem>>, %arg10: memref<128x128xf32, #tpu.memory_space<vmem>>) attributes {dimension_semantics = [#tpu.dimension_semantics<parallel>, #tpu.dimension_semantics<arbitrary>], iteration_bounds = array<i64: 2, 1>, scalar_prefetch = 0 : i64, scratch_operands = 1 : i64, tpu.core_type = #tpu.core_type<tc>, window_params = [{transform_indices = @transform_0, window_bounds = array<i64: 16, 128>}, {pipeline_mode = #tpu.pipeline_mode<synchronous>, transform_indices = @transform_1, window_bounds = array<i64: 128, 128>}, {pipeline_mode = #tpu.pipeline_mode<synchronous>, transform_indices = @transform_2, window_bounds = array<i64: 4, 128>}, {pipeline_mode = #tpu.pipeline_mode<synchronous>, transform_indices = @transform_3, window_bounds = array<i64: 128, 4>}, {pipeline_mode = #tpu.pipeline_mode<synchronous>, transform_indices = @transform_4, window_bounds = array<i64: 2, 128>}, {pipeline_mode = #tpu.pipeline_mode<synchronous>, transform_indices = @transform_5, window_bounds = array<i64: 128, 2>}, {pipeline_mode = #tpu.pipeline_mode<synchronous>, transform_indices = @transform_6, window_bounds = array<i64: 1, 128>}, {transform_indices = @transform_7, window_bounds = array<i64: 16, 128>}]} {
    %c0_i32 = arith.constant 0 : i32
    %0 = arith.cmpi eq, %arg1, %c0_i32 : i32
    %1 = arith.extui %0 : i1 to i32
    %c0_i32_0 = arith.constant 0 : i32
    %2 = arith.cmpi ne, %1, %c0_i32_0 : i32
    scf.if %2 {
      %c0_15 = arith.constant 0 : index
      %c0_16 = arith.constant 0 : index
      %17 = vector.load %arg7[%c0_15, %c0_16] : memref<128x2xf32, #tpu.memory_space<vmem>>, vector<128x2xf32>
      %cst_17 = arith.constant 5.000000e-01 : f32
      %18 = vector.broadcast %cst_17 : f32 to vector<128x2xf32>
      %19 = arith.mulf %17, %18 : vector<128x2xf32>
      %c0_18 = arith.constant 0 : index
      %c0_19 = arith.constant 0 : index
      %20 = vector.load %arg6[%c0_18, %c0_19] : memref<2x128xf32, #tpu.memory_space<vmem>>, vector<2x128xf32>
      %21 = vector.extract_strided_slice %19 {offsets = [0, 0], sizes = [128, 1], strides = [1, 1]} : vector<128x2xf32> to vector<128x1xf32>
      %22 = vector.extract_strided_slice %20 {offsets = [0, 0], sizes = [1, 128], strides = [1, 1]} : vector<2x128xf32> to vector<1x128xf32>
      %23 = vector.broadcast %21 : vector<128x1xf32> to vector<128x128xf32>
      %24 = vector.broadcast %22 : vector<1x128xf32> to vector<128x128xf32>
      %25 = arith.mulf %23, %24 : vector<128x128xf32>
      %26 = vector.extract_strided_slice %19 {offsets = [0, 1], sizes = [128, 1], strides = [1, 1]} : vector<128x2xf32> to vector<128x1xf32>
      %27 = vector.extract_strided_slice %20 {offsets = [1, 0], sizes = [1, 128], strides = [1, 1]} : vector<2x128xf32> to vector<1x128xf32>
      %28 = vector.broadcast %26 : vector<128x1xf32> to vector<128x128xf32>
      %29 = vector.broadcast %27 : vector<1x128xf32> to vector<128x128xf32>
      %30 = arith.mulf %28, %29 : vector<128x128xf32>
      %31 = arith.addf %25, %30 : vector<128x128xf32>
      %c0_20 = arith.constant 0 : index
      %c0_21 = arith.constant 0 : index
      %32 = vector.load %arg3[%c0_20, %c0_21] : memref<128x128xf32, #tpu.memory_space<vmem>>, vector<128x128xf32>
      %33 = arith.mulf %32, %31 : vector<128x128xf32>
      %c0_22 = arith.constant 0 : index
      %c0_23 = arith.constant 0 : index
      %34 = vector.load %arg10[%c0_22, %c0_23] : memref<128x128xf32, #tpu.memory_space<vmem>>, vector<128x128xf32>
      tpu.vector_store %arg10[%c0_22, %c0_23], %33 {strides = array<i32>} : memref<128x128xf32, #tpu.memory_space<vmem>>, vector<128x128xf32>,
    } else {
    }
    %c0 = arith.constant 0 : index
    %c0_1 = arith.constant 0 : index
    %3 = vector.load %arg2[%c0, %c0_1] : memref<16x128xf32, #tpu.memory_space<vmem>>, vector<16x128xf32>
    %c0_2 = arith.constant 0 : index
    %c0_3 = arith.constant 0 : index
    %4 = vector.load %arg10[%c0_2, %c0_3] : memref<128x128xf32, #tpu.memory_space<vmem>>, vector<128x128xf32>
    %cst = arith.constant dense<0.000000e+00> : vector<16x128xf32>
    %5 = tpu.matmul %3, %4, %cst {dimension_numbers = #tpu.dot_dimension_numbers<[1], [1], [0], [0], [0, 0, 1, 0], [], []>} : vector<16x128xf32>, vector<128x128xf32>, vector<16x128xf32> -> vector<16x128xf32>
    %c0_4 = arith.constant 0 : index
    %c0_5 = arith.constant 0 : index
    %6 = vector.load %arg4[%c0_4, %c0_5] : memref<4x128xf32, #tpu.memory_space<vmem>>, vector<4x128xf32>
    %cst_6 = arith.constant dense<0.000000e+00> : vector<16x4xf32>
    %7 = tpu.matmul %3, %6, %cst_6 {dimension_numbers = #tpu.dot_dimension_numbers<[1], [1], [0], [0], [0, 0, 1, 0], [], []>} : vector<16x128xf32>, vector<4x128xf32>, vector<16x4xf32> -> vector<16x4xf32>
    %cst_7 = arith.constant 2.500000e-01 : f32
    %8 = vector.broadcast %cst_7 : f32 to vector<16x4xf32>
    %9 = arith.mulf %7, %8 : vector<16x4xf32>
    %c0_8 = arith.constant 0 : index
    %c0_9 = arith.constant 0 : index
    %10 = vector.load %arg5[%c0_8, %c0_9] : memref<128x4xf32, #tpu.memory_space<vmem>>, vector<128x4xf32>
    %cst_10 = arith.constant dense<0.000000e+00> : vector<16x128xf32>
    %11 = tpu.matmul %9, %10, %cst_10 {dimension_numbers = #tpu.dot_dimension_numbers<[1], [1], [0], [0], [0, 0, 1, 0], [], []>} : vector<16x4xf32>, vector<128x4xf32>, vector<16x128xf32> -> vector<16x128xf32>
    %12 = arith.addf %5, %11 : vector<16x128xf32>
    %c0_11 = arith.constant 0 : index
    %c0_12 = arith.constant 0 : index
    %13 = vector.load %arg8[%c0_11, %c0_12] : memref<1x128xf32, #tpu.memory_space<vmem>>, vector<1x128xf32>
    %14 = vector.broadcast %13 : vector<1x128xf32> to vector<16x128xf32>
    %15 = arith.addf %12, %14 : vector<16x128xf32>
    %c0_13 = arith.constant 0 : index
    %c0_14 = arith.constant 0 : index
    %16 = vector.load %arg9[%c0_13, %c0_14] : memref<16x128xf32, #tpu.memory_space<vmem>>, vector<16x128xf32>
    tpu.vector_store %arg9[%c0_13, %c0_14], %15 {strides = array<i32>} : memref<16x128xf32, #tpu.memory_space<vmem>>, vector<16x128xf32>,
    return
  }
  func.func @transform_0(%arg0: i32, %arg1: i32) -> (i32, i32) {
    %c0_i32 = arith.constant 0 : i32
    %c0_i32_0 = arith.constant 0 : i32
    return %arg1, %c0_i32 : i32, i32
  }
  func.func @transform_1(%arg0: i32, %arg1: i32) -> (i32, i32) {
    %c0_i32 = arith.constant 0 : i32
    %c0_i32_0 = arith.constant 0 : i32
    return %arg0, %c0_i32 : i32, i32
  }
  func.func @transform_2(%arg0: i32, %arg1: i32) -> (i32, i32) {
    %c0_i32 = arith.constant 0 : i32
    %c0_i32_0 = arith.constant 0 : i32
    %c0_i32_1 = arith.constant 0 : i32
    return %c0_i32, %c0_i32_0 : i32, i32
  }
  func.func @transform_3(%arg0: i32, %arg1: i32) -> (i32, i32) {
    %c0_i32 = arith.constant 0 : i32
    %c0_i32_0 = arith.constant 0 : i32
    return %arg0, %c0_i32 : i32, i32
  }
  func.func @transform_4(%arg0: i32, %arg1: i32) -> (i32, i32) {
    %c0_i32 = arith.constant 0 : i32
    %c0_i32_0 = arith.constant 0 : i32
    %c0_i32_1 = arith.constant 0 : i32
    return %c0_i32, %c0_i32_0 : i32, i32
  }
  func.func @transform_5(%arg0: i32, %arg1: i32) -> (i32, i32) {
    %c0_i32 = arith.constant 0 : i32
    %c0_i32_0 = arith.constant 0 : i32
    return %arg0, %c0_i32 : i32, i32
  }
  func.func @transform_6(%arg0: i32, %arg1: i32) -> (i32, i32) {
    %c0_i32 = arith.constant 0 : i32
    %c0_i32_0 = arith.constant 0 : i32
    return %c0_i32, %arg0 : i32, i32
  }
  func.func @transform_7(%arg0: i32, %arg1: i32) -> (i32, i32) {
    %c0_i32 = arith.constant 0 : i32
    return %arg1, %arg0 : i32, i32
  }
}

module attributes {stable_mosaic.version = 11 : i64} {
  func.func @_lora_linear_kernel(%arg0: i32, %arg1: i32, %arg2: memref<16x128xf32, #tpu.memory_space<vmem>>, %arg3: memref<128x128xf32, #tpu.memory_space<vmem>>, %arg4: memref<4x128xf32, #tpu.memory_space<vmem>>, %arg5: memref<128x4xf32, #tpu.memory_space<vmem>>, %arg6: memref<2x128xf32, #tpu.memory_space<vmem>>, %arg7: memref<128x2xf32, #tpu.memory_space<vmem>>, %arg8: memref<1x128xf32, #tpu.memory_space<vmem>>, %arg9: memref<16x128xf32, #tpu.memory_space<vmem>>, %arg10: memref<128x128xf32, #tpu.memory_space<vmem>>) attributes {dimension_semantics = [#tpu.dimension_semantics<parallel>, #tpu.dimension_semantics<arbitrary>], iteration_bounds = array<i64: 2, 1>, scalar_prefetch = 0 : i64, scratch_operands = 1 : i64, tpu.core_type = #tpu.core_type<tc>, window_params = [{transform_indices = @transform_0, window_bounds = array<i64: 16, 128>}, {transform_indices = @transform_1, window_bounds = array<i64: 128, 128>}, {pipeline_mode = #tpu.pipeline_mode<synchronous>, transform_indices = @transform_2, window_bounds = array<i64: 4, 128>}, {transform_indices = @transform_3, window_bounds = array<i64: 128, 4>}, {pipeline_mode = #tpu.pipeline_mode<synchronous>, transform_indices = @transform_4, window_bounds = array<i64: 2, 128>}, {transform_indices = @transform_5, window_bounds = array<i64: 128, 2>}, {transform_indices = @transform_6, window_bounds = array<i64: 1, 128>}, {transform_indices = @transform_7, window_bounds = array<i64: 16, 128>}]} {
    %c0_i32 = arith.constant 0 : i32
    %0 = arith.cmpi eq, %arg1, %c0_i32 : i32
    %1 = arith.extui %0 : i1 to i32
    %c0_i32_0 = arith.constant 0 : i32
    %2 = arith.cmpi ne, %1, %c0_i32_0 : i32
    scf.if %2 {
      %c0_15 = arith.constant 0 : index
      %c0_16 = arith.constant 0 : index
      %17 = vector.load %arg7[%c0_15, %c0_16] : memref<128x2xf32, #tpu.memory_space<vmem>>, vector<128x2xf32>
      %cst_17 = arith.constant 5.000000e-01 : f32
      %18 = vector.broadcast %cst_17 : f32 to vector<128x2xf32>
      %19 = arith.mulf %17, %18 : vector<128x2xf32>
      %c0_18 = arith.constant 0 : index
      %c0_19 = arith.constant 0 : index
      %20 = vector.load %arg6[%c0_18, %c0_19] : memref<2x128xf32, #tpu.memory_space<vmem>>, vector<2x128xf32>
      %21 = vector.extract_strided_slice %19 {offsets = [0, 0], sizes = [128, 1], strides = [1, 1]} : vector<128x2xf32> to vector<128x1xf32>
      %22 = vector.extract_strided_slice %20 {offsets = [0, 0], sizes = [1, 128], strides = [1, 1]} : vector<2x128xf32> to vector<1x128xf32>
      %23 = vector.broadcast %21 : vector<128x1xf32> to vector<128x128xf32>
      %24 = vector.broadcast %22 : vector<1x128xf32> to vector<128x128xf32>
      %25 = arith.mulf %23, %24 : vector<128x128xf32>
      %26 = vector.extract_strided_slice %19 {offsets = [0, 1], sizes = [128, 1], strides = [1, 1]} : vector<128x2xf32> to vector<128x1xf32>
      %27 = vector.extract_strided_slice %20 {offsets = [1, 0], sizes = [1, 128], strides = [1, 1]} : vector<2x128xf32> to vector<1x128xf32>
      %28 = vector.broadcast %26 : vector<128x1xf32> to vector<128x128xf32>
      %29 = vector.broadcast %27 : vector<1x128xf32> to vector<128x128xf32>
      %30 = arith.mulf %28, %29 : vector<128x128xf32>
      %31 = arith.addf %25, %30 : vector<128x128xf32>
      %c0_20 = arith.constant 0 : index
      %c0_21 = arith.constant 0 : index
      %32 = vector.load %arg3[%c0_20, %c0_21] : memref<128x128xf32, #tpu.memory_space<vmem>>, vector<128x128xf32>
      %33 = arith.mulf %32, %31 : vector<128x128xf32>
      %c0_22 = arith.constant 0 : index
      %c0_23 = arith.constant 0 : index
      %34 = vector.load %arg10[%c0_22, %c0_23] : memref<128x128xf32, #tpu.memory_space<vmem>>, vector<128x128xf32>
      tpu.vector_store %arg10[%c0_22, %c0_23], %33 {strides = array<i32>} : memref<128x128xf32, #tpu.memory_space<vmem>>, vector<128x128xf32>,
    } else {
    }
    %c0 = arith.constant 0 : index
    %c0_1 = arith.constant 0 : index
    %3 = vector.load %arg2[%c0, %c0_1] : memref<16x128xf32, #tpu.memory_space<vmem>>, vector<16x128xf32>
    %c0_2 = arith.constant 0 : index
    %c0_3 = arith.constant 0 : index
    %4 = vector.load %arg10[%c0_2, %c0_3] : memref<128x128xf32, #tpu.memory_space<vmem>>, vector<128x128xf32>
    %cst = arith.constant dense<0.000000e+00> : vector<16x128xf32>
    %5 = tpu.matmul %3, %4, %cst {dimension_numbers = #tpu.dot_dimension_numbers<[1], [1], [0], [0], [0, 0, 1, 0], [], []>} : vector<16x128xf32>, vector<128x128xf32>, vector<16x128xf32> -> vector<16x128xf32>
    %c0_4 = arith.constant 0 : index
    %c0_5 = arith.constant 0 : index
    %6 = vector.load %arg4[%c0_4, %c0_5] : memref<4x128xf32, #tpu.memory_space<vmem>>, vector<4x128xf32>
    %cst_6 = arith.constant dense<0.000000e+00> : vector<16x4xf32>
    %7 = tpu.matmul %3, %6, %cst_6 {dimension_numbers = #tpu.dot_dimension_numbers<[1], [1], [0], [0], [0, 0, 1, 0], [], []>} : vector<16x128xf32>, vector<4x128xf32>, vector<16x4xf32> -> vector<16x4xf32>
    %cst_7 = arith.constant 2.500000e-01 : f32
    %8 = vector.broadcast %cst_7 : f32 to vector<16x4xf32>
    %9 = arith.mulf %7, %8 : vector<16x4xf32>
    %c0_8 = arith.constant 0 : index
    %c0_9 = arith.constant 0 : index
    %10 = vector.load %arg5[%c0_8, %c0_9] : memref<128x4xf32, #tpu.memory_space<vmem>>, vector<128x4xf32>
    %cst_10 = arith.constant dense<0.000000e+00> : vector<16x128xf32>
    %11 = tpu.matmul %9, %10, %cst_10 {dimension_numbers = #tpu.dot_dimension_numbers<[1], [1], [0], [0], [0, 0, 1, 0], [], []>} : vector<16x4xf32>, vector<128x4xf32>, vector<16x128xf32> -> vector<16x128xf32>
    %12 = arith.addf %5, %11 : vector<16x128xf32>
    %c0_11 = arith.constant 0 : index
    %c0_12 = arith.constant 0 : index
    %13 = vector.load %arg8[%c0_11, %c0_12] : memref<1x128xf32, #tpu.memory_space<vmem>>, vector<1x128xf32>
    %14 = vector.broadcast %13 : vector<1x128xf32> to vector<16x128xf32>
    %15 = arith.addf %12, %14 : vector<16x128xf32>
    %c0_13 = arith.constant 0 : index
    %c0_14 = arith.constant 0 : index
    %16 = vector.load %arg9[%c0_13, %c0_14] : memref<16x128xf32, #tpu.memory_space<vmem>>, vector<16x128xf32>
    tpu.vector_store %arg9[%c0_13, %c0_14], %15 {strides = array<i32>} : memref<16x128xf32, #tpu.memory_space<vmem>>, vector<16x128xf32>,
    return
  }
  func.func @transform_0(%arg0: i32, %arg1: i32) -> (i32, i32) {
    %c0_i32 = arith.constant 0 : i32
    %c0_i32_0 = arith.constant 0 : i32
    return %arg1, %c0_i32 : i32, i32
  }
  func.func @transform_1(%arg0: i32, %arg1: i32) -> (i32, i32) {
    %c0_i32 = arith.constant 0 : i32
    %c0_i32_0 = arith.constant 0 : i32
    return %arg0, %c0_i32 : i32, i32
  }
  func.func @transform_2(%arg0: i32, %arg1: i32) -> (i32, i32) {
    %c0_i32 = arith.constant 0 : i32
    %c0_i32_0 = arith.constant 0 : i32
    %c0_i32_1 = arith.constant 0 : i32
    return %c0_i32, %c0_i32_0 : i32, i32
  }
  func.func @transform_3(%arg0: i32, %arg1: i32) -> (i32, i32) {
    %c0_i32 = arith.constant 0 : i32
    %c0_i32_0 = arith.constant 0 : i32
    return %arg0, %c0_i32 : i32, i32
  }
  func.func @transform_4(%arg0: i32, %arg1: i32) -> (i32, i32) {
    %c0_i32 = arith.constant 0 : i32
    %c0_i32_0 = arith.constant 0 : i32
    %c0_i32_1 = arith.constant 0 : i32
    return %c0_i32, %c0_i32_0 : i32, i32
  }
  func.func @transform_5(%arg0: i32, %arg1: i32) -> (i32, i32) {
    %c0_i32 = arith.constant 0 : i32
    %c0_i32_0 = arith.constant 0 : i32
    return %arg0, %c0_i32 : i32, i32
  }
  func.func @transform_6(%arg0: i32, %arg1: i32) -> (i32, i32) {
    %c0_i32 = arith.constant 0 : i32
    %c0_i32_0 = arith.constant 0 : i32
    return %c0_i32, %arg0 : i32, i32
  }
  func.func @transform_7(%arg0: i32, %arg1: i32) -> (i32, i32) {
    %c0_i32 = arith.constant 0 : i32
    return %arg1, %arg0 : i32, i32
  }
}

</mosaic_0001>

<bundles_post_ra>
// kernel: tpu_custom_call.1
= control target key start
LH: loop header
LB: loop body
LE: loop exit
PB: predicated region body
PF: predicated region fallthrough
CT: control target
= control target key end

     0   :  { %12 = vsyncpa [#allocation4], 0  ;;  %s1530_s0 = inlined_call_operand.vmem [shape: f32[16,128], index: 0, kind: input, shape index: {}]   ;;  %s1531_s1 = inlined_call_operand.vmem [shape: f32[256,128], index: 1, kind: input, shape index: {}]   ;;  %s1532_s2 = inlined_call_operand.vmem [shape: f32[4,128], index: 2, kind: input, shape index: {}]   ;;  %s1533_s3 = inlined_call_operand.vmem [shape: f32[256,4], index: 3, kind: input, shape index: {}]   ;;  %s1534_s4 = inlined_call_operand.vmem [shape: f32[2,128], index: 4, kind: input, shape index: {}]   ;;  %s1535_s5 = inlined_call_operand.vmem [shape: f32[256,2], index: 5, kind: input, shape index: {}]   ;;  %s1536_s6 = inlined_call_operand.vmem [shape: f32[1,256], index: 6, kind: input, shape index: {}]   ;;  %s1537_s7 = inlined_call_operand.hbm [shape: f32[16,256], index: 7, kind: output, shape index: {}]  }
   0x1   :  { %14 = vsyncpa [#allocation4 + $0x1], 0  ;;  %s1245_s24 = smov 0   ;;  %s1247_s25 = smov 0  }
   0x2   :  { %s1249_s26 = smov 0   ;;  %s1251_s27 = smov 0  }
   0x3   :  { %s1253_s28 = smov 0   ;;  %s1255_s29 = smov 0  }
   0x4 LB: > { %s972_s30 = sadd.s32 4294967295, %s1198_s29   ;;  %s973_s8 = sadd.s32 4294967294, %s1198_s29   ;;  %s1198_s29 = sphi %s1255_s29, %s20_s29   ;;  %s1194_s28 = sphi %s1253_s28, %s1544_s28   ;;  %s1190_s27 = sphi %s1251_s27, %s1543_s27   ;;  %s1186_s26 = sphi %s1249_s26, %s1542_s26   ;;  %s1182_s25 = sphi %s1247_s25, %s1541_s25   ;;  %s1178_s24 = sphi %s1245_s24, %s1540_s24  }
   0x5   : > { %s32_s9 = sadd.s32 1, %s1194_s28  ;;  %s213_s10 = sadd.s32 1, %s1186_s26 }
   0x6   : > { %p34_p0 = scmp.ge.s32.totalorder %s32_s9, 2  ;;  %p223_p1 = scmp.ne.s32.totalorder %s1186_s26, %s1182_s25 }
   0x7   : > { %p224_p2 = scmp.eq.s32.totalorder %s972_s30, 1  ;;  %p229_p3 = scmp.ne.s32.totalorder %s1182_s25, %s1178_s24 }
   0x8   : > { %s1546_s9 = smov (%p34_p0, %s32_s9), 0  ;;  %p230_p5 = scmp.eq.s32.totalorder %s973_s8, 1 }
   0x9   : > { %p1285_p4 = por %p224_p2, %p223_p1  ;;  %s209_s12 = ssub.s32 %s1194_s28, %s1546_s9 }
   0xa   : > { %p976_p6 = scmp.ge.s32.totalorder %s1198_s29, 1  ;;  %p211_p7 = scmp.eq.s32.totalorder %s209_s12, 0 }
   0xb   : > { %p1292_p8 = por %p230_p5, %p229_p3  ;;  %p296_p9 = scmp.lt.s32.totalorder %s1198_s29, 3 }
   0xc   : > { %s1298_s14 = scalar_select %p211_p7, %s1186_s26, %s213_s10  }
   0xd   : > { %p297_p10 = pnand %p976_p6, %p296_p9 }
   0xe   : > { %s978_s15 = sshll.u32 (!%p297_p10), %s1190_s27, 4  ;;  %p370_p12 = scmp.lt.s32.totalorder (!%p297_p10), %s1190_s27, 1 }
   0xf   : > { %300 = sbr.rel (%p297_p10) target bundleno = 394 (0x18a), region = 48  ;;  %p353_p11 = scmp.lt.s32.totalorder (!%p297_p10), %s978_s15, 31 }
  0x10   : > { %s343_s8 = sand.u32 (!%p297_p10), 1, %s1182_s25   ;;  %s1003_s17 = sshll.u32 (!%p297_p10), %s1190_s27, 3 }
  0x11   : > { %s977_s10 = sshll.u32 (!%p297_p10), %s343_s8, 4  ;;  %s836_s20 = scalar_lea.hbm (!%p297_p10), %s1537_s7, %s1003_s17 }
  0x12   : > { %s839_s23 = sshll.u32 (!%p297_p10), %s836_s20, 4  ;;  %s840_s23 = int_to_ptr.hbm [resolvable:$true] %s839_s23 }
  0x14   : > { %v1200_v0 = vmov 0   ;;  %s1548_s15 = smov (!%p353_p11, %s978_s15), 31  ;;  %v1201_v7 = vmov 1   ;;  %v671_v24 = vld [vmem:[%s1532_s2] sm:$0xf]  ;;  %v1350_v30 = vld [vmem:[%s1530_s0 + $0x8] sm:$0xff] }
  0x15   : > { %1100 = vset.pattern.permute.xlu1 %v1200_v0  ;;  %1098 = vset.pattern.permute.xlu0 %v1200_v0  ;;  %s1304_s16 = sshll.u32 %s1548_s15, 3  ;;  %v1340_v25 = vld [vmem:[%s1530_s0] sm:$0xff]  ;;  %vm713_vm0 = vcmask 31744   ;;  %s1140_s15 = scalar_lea.hbm %s1537_s7, 32 }
  0x16   : > { %1102 = vset.pattern.permute.xlu2 %v1200_v0  ;;  %s1310_s19 = scalar_lea.vmem %s1535_s5, %s1304_s16  ;;  %687 = vmatpush.xpose.msra.mxu0 %v671_v24  ;;  %v410_v42 = vld [vmem:[%s1534_s4] sm:$0x3]  ;;  %s1368_s18 = scalar_lea.vmem %s1533_s3, %s1304_s16 }
  0x17   : > { %v393_v1 = vld [vmem:[%s1310_s19 + $0x78] sm:$0xff]  ;;  %v392_v2 = vld [vmem:[%s1310_s19 + $0x70] sm:$0xff]  ;;  %v391_v5 = vld [vmem:[%s1310_s19 + $0x68] sm:$0xff]  ;;  %v1370_v43 = vperm.slane %v410_v42, 0  ;;  %v1372_v44 = vperm.slane %v410_v42, 1  ;;  %s1382_s21 = scalar_lea.vmem %s1531_s1, %s1304_s16 }
  0x18   : > { %v409_v3 = vmul.f32 0.5, %v393_v1  ;;  %v408_v4 = vmul.f32 0.5, %v392_v2  ;;  %v407_v6 = vmul.f32 0.5, %v391_v5  ;;  %v387_v8 = vld [vmem:[%s1310_s19 + $0x48] sm:$0xff]  ;;  %v390_v9 = vld [vmem:[%s1310_s19 + $0x60] sm:$0xff]  ;;  %v389_v12 = vld [vmem:[%s1310_s19 + $0x58] sm:$0xff] }
  0x19   : > { %v403_v10 = vmul.f32 0.5, %v387_v8  ;;  %v406_v11 = vmul.f32 0.5, %v390_v9  ;;  %v405_v13 = vmul.f32 0.5, %v389_v12  ;;  %v388_v14 = vld [vmem:[%s1310_s19 + $0x50] sm:$0xff]  ;;  %v382_v18 = vld [vmem:[%s1310_s19 + $0x20] sm:$0xff]  ;;  %v385_v22 = vld [vmem:[%s1310_s19 + $0x38] sm:$0xff]  ;;  %688 = vmatmul.f32.vlgmr.msra.gmra.mxu0 %v1340_v25 }
  0x1a   : > { %488 = vperm.xlu0 %1098, %v409_v3   ;;  %483 = vperm.xlu1 %1100, %v408_v4   ;;  %v404_v15 = vmul.f32 0.5, %v388_v14  ;;  %v384_v16 = vld [vmem:[%s1310_s19 + $0x30] sm:$0xff]  ;;  %v386_v19 = vld [vmem:[%s1310_s19 + $0x40] sm:$0xff]  ;;  %v398_v20 = vmul.f32 0.5, %v382_v18  ;;  %v401_v23 = vmul.f32 0.5, %v385_v22  ;;  %v383_v26 = vld [vmem:[%s1310_s19 + $0x28] sm:$0xff] }
  0x1b   : > { %478 = vperm.xlu2 %1102, %v407_v6   ;;  %v400_v17 = vmul.f32 0.5, %v384_v16  ;;  %v402_v21 = vmul.f32 0.5, %v386_v19  ;;  %v399_v27 = vmul.f32 0.5, %v383_v26  ;;  %v379_v28 = vld [vmem:[%s1310_s19 + $0x8] sm:$0xff]  ;;  %v381_v31 = vld [vmem:[%s1310_s19 + $0x18] sm:$0xff]  ;;  %v380_v33 = vld [vmem:[%s1310_s19 + $0x10] sm:$0xff] }
  0x1c   : > { %v395_v29 = vmul.f32 0.5, %v379_v28  ;;  %v397_v32 = vmul.f32 0.5, %v381_v31  ;;  %v396_v34 = vmul.f32 0.5, %v380_v33  ;;  %v378_v35 = vld [vmem:[%s1310_s19] sm:$0xff]  ;;  %v712_v45 = vld [vmem:[%s1368_s18 + $0x78] sm:$0xff]  ;;  %v711_v56 = vld [vmem:[%s1368_s18 + $0x70] sm:$0xff] }
  0x1d   : > { %v394_v36 = vmul.f32 0.5, %v378_v35  ;;  %984 = vmatpush.xpose.msk.msra.mxu1 %vm713_vm0, %v712_v45  ;;  %1006 = vmatpush.xpose.msk.msra.mxu3 %vm713_vm0, %v712_v45  ;;  %v620_v51 = vld [vmem:[%s1382_s21 + $0x78] sm:$0xff]  ;;  %v619_v60 = vld [vmem:[%s1382_s21 + $0x70] sm:$0xff]  ;;  %v710_v61 = vld [vmem:[%s1368_s18 + $0x68] sm:$0xff]  ;;  %s1468_s16 = scalar_select %p370_p12, %s1190_s27, 1 }
  0x1e   : > { %v709_v5 = vld [vmem:[%s1368_s18 + $0x60] sm:$0xff]  ;;  %v616_v16 = vld [vmem:[%s1382_s21 + $0x58] sm:$0xff]  ;;  %v615_v28 = vld [vmem:[%s1382_s21 + $0x50] sm:$0xff]  ;;  %s823_s27 = scalar_lea.sflag [#allocation4], %s343_s8 }
  0x1f   : > { %v617_v9 = vld [vmem:[%s1382_s21 + $0x60] sm:$0xff]  ;;  %v614_v35 = vld [vmem:[%s1382_s21 + $0x48] sm:$0xff]  ;;  %s372_s30 = scalar_lea.vmem %s1536_s6, %s1468_s16  ;;  %s1134_s16 = sshra.s32 %s840_s23, 4  ;;  %s1135_s16 = int_to_ptr.hbm [resolvable:$true] %s1134_s16 }
  0x20   : > { %v613_v42 = vld [vmem:[%s1382_s21 + $0x40] sm:$0xff]  ;;  %p1141_p2 = scmp.lt.s32.totalorder %s1135_s16, %s1537_s7 }
  0x21   : > { %691 = vmatmul.f32.gmra.mxu0 %v1350_v30  ;;  %985 = vmatpush.xpose.msk.msra.mxu1 %vm713_vm0, %v711_v56 }
  0x22   : > { %1099 = vset.pattern.permute.xlu0 %v1201_v7  ;;  %1101 = vset.pattern.permute.xlu1 %v1201_v7 }
  0x23   : > { %569 = vperm.xlu0 %1099, %v409_v3   ;;  %565 = vperm.xlu1 %1101, %v408_v4   ;;  %v618_v4 = vld [vmem:[%s1382_s21 + $0x68] sm:$0xff] }
  0x24   : > { %1103 = vset.pattern.permute.xlu2 %v1201_v7  ;;  %1007 = vmatpush.xpose.msk.msra.mxu3 %vm713_vm0, %v711_v56  ;;  %v700_v56 = vld [vmem:[%s1368_s18 + $0x18] sm:$0xff] }
  0x25   : > { %561 = vperm.xlu2 %1103, %v407_v6   ;;  %986 = vmatpush.xpose.msk.msra.mxu1 %vm713_vm0, %v710_v61 }
  0x28   : > { %1008 = vmatpush.xpose.msk.msra.mxu3 %vm713_vm0, %v710_v61 }
  0x29   : > { %987 = vmatpush.xpose.msk.msra.mxu1 %vm713_vm0, %v709_v5 }
  0x2b   : > { %1104 = vset.pattern.permute.xlu1 %v1200_v0  ;;  %545 = vperm.xlu0 %1099, %v403_v10  }
  0x2c   : > { %473 = vperm.xlu1 %1104, %v406_v11   ;;  %1009 = vmatpush.xpose.msk.msra.mxu3 %vm713_vm0, %v709_v5 }
  0x2d   : > { %557 = vperm.xlu2 %1103, %v406_v11  }
  0x33   : > { %1107 = vset.pattern.permute.xlu0 %v1200_v0 }
  0x34   : > { %1105 = vset.pattern.permute.xlu1 %v1201_v7  ;;  %468 = vperm.xlu0 %1107, %v405_v13  }
  0x35   : > { %553 = vperm.xlu1 %1105, %v405_v13   ;;  %1106 = vset.pattern.permute.xlu2 %v1200_v0 }
  0x36   : > { %463 = vperm.xlu2 %1106, %v404_v15  }
  0x3c   : > { %443 = vperm.xlu0 %1107, %v400_v17  }
  0x3d   : > { %549 = vperm.xlu1 %1105, %v404_v15  }
  0x3e   : > { %458 = vperm.xlu2 %1106, %v403_v10   ;;  %v708_v10 = vld [vmem:[%s1368_s18 + $0x58] sm:$0xff] }
  0x3f   : > { %988 = vmatpush.xpose.msk.msra.mxu1 %vm713_vm0, %v708_v10  ;;  %1010 = vmatpush.xpose.msk.msra.mxu3 %vm713_vm0, %v708_v10  ;;  %v697_v10 = vld [vmem:[%s1368_s18] sm:$0xff] }
  0x44   : > { %1112 = vset.pattern.permute.xlu0 %v1201_v7 }
  0x45   : > { %1108 = vset.pattern.permute.xlu1 %v1200_v0  ;;  %525 = vperm.xlu0 %1112, %v398_v20  }
  0x46   : > { %453 = vperm.xlu1 %1108, %v402_v21   ;;  %1109 = vset.pattern.permute.xlu2 %v1201_v7 }
  0x47   : > { %541 = vperm.xlu2 %1109, %v402_v21   ;;  %v706_v21 = vld [vmem:[%s1368_s18 + $0x48] sm:$0xff] }
  0x4d   : > { %1115 = vset.pattern.permute.xlu0 %v1200_v0 }
  0x4e   : > { %448 = vperm.xlu1 %1108, %v401_v23   ;;  %418 = vperm.xlu0 %1115, %v395_v29  }
  0x4f   : > { %537 = vperm.xlu2 %1109, %v401_v23  }
  0x56   : > { %1110 = vset.pattern.permute.xlu1 %v1201_v7  ;;  %1118 = vset.pattern.permute.xlu0 %v1201_v7 }
  0x57   : > { %533 = vperm.xlu1 %1110, %v400_v17   ;;  %1111 = vset.pattern.permute.xlu2 %v1200_v0  ;;  %v707_v17 = vld [vmem:[%s1368_s18 + $0x50] sm:$0xff] }
  0x58   : > { %438 = vperm.xlu2 %1111, %v399_v27   ;;  %989 = vmatpush.xpose.msk.msra.mxu1 %vm713_vm0, %v707_v17 }
  0x59   : > { %1011 = vmatpush.xpose.msk.msra.mxu3 %vm713_vm0, %v707_v17  ;;  %v609_v17 = vld [vmem:[%s1382_s21 + $0x20] sm:$0xff] }
  0x5c   : > { %990 = vmatpush.xpose.msk.msra.mxu1 %vm713_vm0, %v706_v21 }
  0x5d   : > { %1012 = vmatpush.xpose.msk.msra.mxu3 %vm713_vm0, %v706_v21 }
  0x5f   : > { %529 = vperm.xlu1 %1110, %v399_v27  }
  0x60   : > { %433 = vperm.xlu2 %1111, %v398_v20  }
  0x67   : > { %1113 = vset.pattern.permute.xlu1 %v1200_v0 }
  0x68   : > { %428 = vperm.xlu1 %1113, %v397_v32   ;;  %1114 = vset.pattern.permute.xlu2 %v1201_v7 }
  0x69   : > { %521 = vperm.xlu2 %1114, %v397_v32  }
  0x70   : > { %423 = vperm.xlu1 %1113, %v396_v34  }
  0x71   : > { %517 = vperm.xlu2 %1114, %v396_v34   ;;  %v704_v34 = vld [vmem:[%s1368_s18 + $0x38] sm:$0xff] }
  0x75   : > { %v479_v37 = vpop.permute.xlu2 %478 }
  0x76   : > { %v505_v55 = vmul.f32 %v1370_v43, %v479_v37 }
  0x78   : > { %1116 = vset.pattern.permute.xlu1 %v1201_v7 }
  0x79   : > { %513 = vperm.xlu1 %1116, %v395_v29   ;;  %1117 = vset.pattern.permute.xlu2 %v1200_v0  ;;  %v705_v29 = vld [vmem:[%s1368_s18 + $0x40] sm:$0xff] }
  0x7a   : > { %413 = vperm.xlu2 %1117, %v394_v36   ;;  %991 = vmatpush.xpose.msk.msra.mxu1 %vm713_vm0, %v705_v29 }
  0x7b   : > { %1013 = vmatpush.xpose.msk.msra.mxu3 %vm713_vm0, %v705_v29 }
  0x7e   : > { %992 = vmatpush.xpose.msk.msra.mxu1 %vm713_vm0, %v704_v34 }
  0x7f   : > { %v562_v38 = vpop.permute.xlu2 %561  ;;  %1014 = vmatpush.xpose.msk.msra.mxu3 %vm713_vm0, %v704_v34 }
  0x80   : > { %v586_v58 = vmul.f32 %v1372_v44, %v562_v38 }
  0x81   : > { %509 = vperm.xlu1 %1116, %v394_v36  }
  0x82   : > { %v602_v63 = vadd.f32 %v586_v58, %v505_v55 }
  0x84   : > { %v634_v7 = vmul.f32 %v618_v4, %v602_v63  ;;  %v611_v63 = vld [vmem:[%s1382_s21 + $0x30] sm:$0xff] }
  0x87   : > { %v558_v41 = vpop.permute.xlu2 %557 }
  0x88   : > { %v585_v0 = vmul.f32 %v1372_v44, %v558_v41  ;;  %v703_v41 = vld [vmem:[%s1368_s18 + $0x30] sm:$0xff] }
  0x89   : > { %993 = vmatpush.xpose.msk.msra.mxu1 %vm713_vm0, %v703_v41  ;;  %1015 = vmatpush.xpose.msk.msra.mxu3 %vm713_vm0, %v703_v41 }
  0x8c   : > { %v484_v39 = vpop.permute.xlu1 %483  ;;  %v489_v40 = vpop.permute.xlu0 %488 }
  0x8d   : > { %v507_v46 = vmul.f32 %v1370_v43, %v489_v40  ;;  %v506_v52 = vmul.f32 %v1370_v43, %v484_v39 }
  0x90   : > { %v464_v54 = vpop.permute.xlu2 %463 }
  0x91   : > { %v502_v22 = vmul.f32 %v1370_v43, %v464_v54 }
  0x95   : > { %v570_v47 = vpop.permute.xlu0 %569  ;;  %v566_v48 = vpop.permute.xlu1 %565 }
  0x96   : > { %v588_v49 = vmul.f32 %v1372_v44, %v570_v47  ;;  %v587_v50 = vmul.f32 %v1372_v44, %v566_v48  ;;  %v702_v47 = vld [vmem:[%s1368_s18 + $0x28] sm:$0xff] }
  0x97   : > { %994 = vmatpush.xpose.msk.msra.mxu1 %vm713_vm0, %v702_v47  ;;  %1016 = vmatpush.xpose.msk.msra.mxu3 %vm713_vm0, %v702_v47 }
  0x98   : > { %v604_v53 = vadd.f32 %v588_v49, %v507_v46  ;;  %v603_v57 = vadd.f32 %v587_v50, %v506_v52  ;;  %v459_v8 = vpop.permute.xlu2 %458  ;;  %v701_v52 = vld [vmem:[%s1368_s18 + $0x20] sm:$0xff] }
  0x99   : > { %v501_v27 = vmul.f32 %v1370_v43, %v459_v8 }
  0x9a   : > { %v636_v59 = vmul.f32 %v620_v51, %v604_v53  ;;  %v635_v2 = vmul.f32 %v619_v60, %v603_v57  ;;  %v612_v53 = vld [vmem:[%s1382_s21 + $0x38] sm:$0xff] }
  0x9b   : > { %995 = vmatpush.xpose.msk.msra.mxu1 %vm713_vm0, %v701_v52  ;;  %1017 = vmatpush.xpose.msk.msra.mxu3 %vm713_vm0, %v701_v52  ;;  %v1119_v52 = vld [vmem:[%s372_s30] ss:$0 sm:$0xff]  ;;  %s1136_s30 = scalar_lea.hbm %s1135_s16, 16 }
  0x9c   : > { %791 = vmatpush.xpose.msrb.mxu0 %v636_v59  ;;  %1022 = vmatpush.xpose.msra.mxu2 %v636_v59  ;;  %v699_v59 = vld [vmem:[%s1368_s18 + $0x10] sm:$0xff]  ;;  %p1137_p13 = scmp.ne.s32.totalorder %s1135_s16, %s1136_s30  ;;  %p1142_p3 = scmp.lt.s32.totalorder %s1140_s15, %s1136_s30 }
  0x9d   : > { %v546_v62 = vpop.permute.xlu0 %545 }
  0x9e   : > { %v474_v1 = vpop.permute.xlu1 %473  ;;  %v582_v24 = vmul.f32 %v1372_v44, %v546_v62  ;;  %p1138_p0 = pnand %p1137_p13, %p1285_p4  ;;  %p1143_p5 = por %p1142_p3, %p1141_p2 }
  0x9f   : > { %v504_v3 = vmul.f32 %v1370_v43, %v474_v1  ;;  %996 = vmatpush.xpose.msk.msra.mxu1 %vm713_vm0, %v700_v56  ;;  %1018 = vmatpush.xpose.msk.msra.mxu3 %vm713_vm0, %v700_v56 }
  0xa0   : > { %792 = vmatpush.xpose.msrb.mxu0 %v635_v2  ;;  %1023 = vmatpush.xpose.msra.mxu2 %v635_v2  ;;  %v598_v32 = vadd.f32 %v582_v24, %v501_v27  ;;  %v698_v2 = vld [vmem:[%s1368_s18 + $0x8] sm:$0xff]  ;;  %v608_v24 = vld [vmem:[%s1382_s21 + $0x18] sm:$0xff]  ;;  %p1139_p1 = pneg %p1138_p0 }
  0xa1   : > { %v601_v6 = vadd.f32 %v585_v0, %v504_v3  ;;  %v542_v20 = vpop.permute.xlu2 %541 }
  0xa2   : > { %v581_v37 = vmul.f32 %v1372_v44, %v542_v20  ;;  %v630_v39 = vmul.f32 %v614_v35, %v598_v32  ;;  %p1144_p6 = pnand %p1143_p5, %p1139_p1 }
  0xa3   : > { %v633_v12 = vmul.f32 %v617_v9, %v601_v6  ;;  %997 = vmatpush.xpose.msk.msra.mxu1 %vm713_vm0, %v699_v59  ;;  %1019 = vmatpush.xpose.msk.msra.mxu3 %vm713_vm0, %v699_v59  ;;  %v689_v6 = vpop.f32.mrf.mxu0 }
  0xa4   : > { %793 = vmatpush.xpose.msrb.mxu0 %v634_v7  ;;  %1024 = vmatpush.xpose.msra.mxu2 %v634_v7 }
  0xa6   : > { %v469_v11 = vpop.permute.xlu0 %468 }
  0xa7   : > { %v554_v13 = vpop.permute.xlu1 %553  ;;  %v503_v14 = vmul.f32 %v1370_v43, %v469_v11  ;;  %998 = vmatpush.xpose.msk.msra.mxu1 %vm713_vm0, %v698_v2  ;;  %1020 = vmatpush.xpose.msk.msra.mxu3 %vm713_vm0, %v698_v2  ;;  %v610_v11 = vld [vmem:[%s1382_s21 + $0x28] sm:$0xff] }
  0xa8   : > { %v584_v15 = vmul.f32 %v1372_v44, %v554_v13  ;;  %794 = vmatpush.xpose.msrb.mxu0 %v633_v12  ;;  %1025 = vmatpush.xpose.msra.mxu2 %v633_v12 }
  0xa9   : > { %v538_v36 = vpop.permute.xlu2 %537 }
  0xaa   : > { %v600_v18 = vadd.f32 %v584_v15, %v503_v14  ;;  %v580_v48 = vmul.f32 %v1372_v44, %v538_v36  ;;  %v695_v14 = vmul.f32 0.25, %v689_v6 }
  0xab   : > { %999 = vmatpush.xpose.msk.msra.mxu1 %vm713_vm0, %v697_v10  ;;  %1021 = vmatpush.xpose.msk.msra.mxu3 %vm713_vm0, %v697_v10 }
  0xac   : > { %v632_v19 = vmul.f32 %v616_v16, %v600_v18 }
  0xae   : > { %795 = vmatpush.xpose.msrb.mxu0 %v632_v19  ;;  %1026 = vmatpush.xpose.msra.mxu2 %v632_v19  ;;  %v444_v57 = vpop.permute.xlu0 %443  ;;  %v692_v19 = vpop.f32.mrf.mxu0 }
  0xaf   : > { %v550_v23 = vpop.permute.xlu1 %549  ;;  %v498_v60 = vmul.f32 %v1370_v43, %v444_v57  ;;  %1000 = vmatmul.msk.f32.vlgmr.msra.gmra.mxu1 %vm713_vm0, %v695_v14 }
  0xb0   : > { %v583_v26 = vmul.f32 %v1372_v44, %v550_v23 }
  0xb2   : > { %v599_v31 = vadd.f32 %v583_v26, %v502_v22  ;;  %v439_v50 = vpop.permute.xlu2 %438  ;;  %v696_v22 = vmul.f32 0.25, %v692_v19 }
  0xb3   : > { %v497_v4 = vmul.f32 %v1370_v43, %v439_v50 }
  0xb4   : > { %v631_v33 = vmul.f32 %v615_v28, %v599_v31  ;;  %1001 = vmatmul.msk.f32.vlgmr.msra.gmra.mxu3 %vm713_vm0, %v696_v22 }
  0xb6   : > { %796 = vmatpush.xpose.msrb.mxu0 %v631_v33  ;;  %1027 = vmatpush.xpose.msra.mxu2 %v631_v33  ;;  %v607_v33 = vld [vmem:[%s1382_s21 + $0x10] sm:$0xff] }
  0xb7   : > { %v526_v3 = vpop.permute.xlu0 %525 }
  0xb8   : > { %v454_v38 = vpop.permute.xlu1 %453  ;;  %v577_v8 = vmul.f32 %v1372_v44, %v526_v3 }
  0xb9   : > { %v500_v40 = vmul.f32 %v1370_v43, %v454_v38 }
  0xba   : > { %797 = vmatpush.xpose.msrb.mxu0 %v630_v39  ;;  %1028 = vmatpush.xpose.msra.mxu2 %v630_v39  ;;  %v434_v62 = vpop.permute.xlu2 %433 }
  0xbb   : > { %v597_v45 = vadd.f32 %v581_v37, %v500_v40  ;;  %v496_v9 = vmul.f32 %v1370_v43, %v434_v62  ;;  %v606_v40 = vld [vmem:[%s1382_s21 + $0x8] sm:$0xff] }
  0xbd   : > { %v629_v46 = vmul.f32 %v613_v42, %v597_v45  ;;  %v593_v15 = vadd.f32 %v577_v8, %v496_v9 }
  0xbf   : > { %798 = vmatpush.xpose.msrb.mxu0 %v629_v46  ;;  %1029 = vmatpush.xpose.msra.mxu2 %v629_v46  ;;  %v625_v21 = vmul.f32 %v609_v17, %v593_v15 }
  0xc0   : > { %v449_v49 = vpop.permute.xlu1 %448  ;;  %v419_v36 = vpop.permute.xlu0 %418 }
  0xc1   : > { %v499_v51 = vmul.f32 %v1370_v43, %v449_v49  ;;  %v493_v37 = vmul.f32 %v1370_v43, %v419_v36  ;;  %v605_v49 = vld [vmem:[%s1382_s21] sm:$0xff]  ;;  %s345_s21 = scalar_lea.vmem [#allocation3], %s977_s10 }
  0xc2   : > { %s837_s22 = sshll.u32 %s345_s21, 4  ;;  %s838_s22 = int_to_ptr.vmem [resolvable:$true] %s837_s22 }
  0xc3   : > { %v596_v54 = vadd.f32 %v580_v48, %v499_v51  ;;  %v522_v13 = vpop.permute.xlu2 %521 }
  0xc4   : > { %v576_v18 = vmul.f32 %v1372_v44, %v522_v13 }
  0xc5   : > { %v628_v55 = vmul.f32 %v612_v53, %v596_v54 }
  0xc7   : > { %799 = vmatpush.xpose.msrb.mxu0 %v628_v55  ;;  %1030 = vmatpush.xpose.msra.mxu2 %v628_v55 }
  0xc9   : > { %v534_v58 = vpop.permute.xlu1 %533 }
  0xca   : > { %v579_v61 = vmul.f32 %v1372_v44, %v534_v58 }
  0xcb   : > { %v518_v27 = vpop.permute.xlu2 %517 }
  0xcc   : > { %v595_v0 = vadd.f32 %v579_v61, %v498_v60  ;;  %v575_v29 = vmul.f32 %v1372_v44, %v518_v27 }
  0xce   : > { %v627_v1 = vmul.f32 %v611_v63, %v595_v0 }
  0xd0   : > { %800 = vmatpush.xpose.msrb.mxu0 %v627_v1  ;;  %1031 = vmatpush.xpose.msra.mxu2 %v627_v1 }
  0xd1   : > { %v530_v5 = vpop.permute.xlu1 %529 }
  0xd2   : > { %v578_v7 = vmul.f32 %v1372_v44, %v530_v5 }
  0xd4   : > { %v594_v12 = vadd.f32 %v578_v7, %v497_v4  ;;  %v414_v42 = vpop.permute.xlu2 %413 }
  0xd5   : > { %v492_v46 = vmul.f32 %v1370_v43, %v414_v42 }
  0xd6   : > { %v626_v16 = vmul.f32 %v610_v11, %v594_v12 }
  0xd8   : > { %801 = vmatpush.xpose.msrb.mxu0 %v626_v16  ;;  %1032 = vmatpush.xpose.msra.mxu2 %v626_v16 }
  0xda   : > { %v429_v20 = vpop.permute.xlu1 %428 }
  0xdb   : > { %v495_v23 = vmul.f32 %v1370_v43, %v429_v20 }
  0xdc   : > { %802 = vmatpush.xpose.msrb.mxu0 %v625_v21  ;;  %1033 = vmatpush.xpose.msra.mxu2 %v625_v21 }
  0xdd   : > { %v592_v26 = vadd.f32 %v576_v18, %v495_v23 }
  0xdf   : > { %v624_v28 = vmul.f32 %v608_v24, %v592_v26 }
  0xe1   : > { %803 = vmatpush.xpose.msrb.mxu0 %v624_v28  ;;  %1034 = vmatpush.xpose.msra.mxu2 %v624_v28 }
  0xe2   : > { %v424_v31 = vpop.permute.xlu1 %423 }
  0xe3   : > { %v494_v32 = vmul.f32 %v1370_v43, %v424_v31 }
  0xe5   : > { %v591_v34 = vadd.f32 %v575_v29, %v494_v32 }
  0xe7   : > { %v623_v35 = vmul.f32 %v607_v33, %v591_v34 }
  0xe9   : > { %804 = vmatpush.xpose.msrb.mxu0 %v623_v35  ;;  %1035 = vmatpush.xpose.msra.mxu2 %v623_v35 }
  0xeb   : > { %v514_v38 = vpop.permute.xlu1 %513 }
  0xec   : > { %v574_v39 = vmul.f32 %v1372_v44, %v514_v38 }
  0xee   : > { %v590_v41 = vadd.f32 %v574_v39, %v493_v37 }
  0xf0   : > { %v622_v45 = vmul.f32 %v606_v40, %v590_v41 }
  0xf2   : > { %805 = vmatpush.xpose.msrb.mxu0 %v622_v45  ;;  %1036 = vmatpush.xpose.msra.mxu2 %v622_v45 }
  0xf3   : > { %v510_v47 = vpop.permute.xlu1 %509 }
  0xf4   : > { %v573_v48 = vmul.f32 %v1372_v44, %v510_v47 }
  0xf6   : > { %v589_v50 = vadd.f32 %v573_v48, %v492_v46 }
  0xf8   : > { %v621_v51 = vmul.f32 %v605_v49, %v589_v50 }
  0xfa   : > { %806 = vmatpush.xpose.msrb.mxu0 %v621_v51  ;;  %1037 = vmatpush.xpose.msra.mxu2 %v621_v51 }
  0xfd   : > { %807 = vmatmul.f32.vlgmr.msrb.gmra.mxu0 %v1340_v25  ;;  %810 = vmatmul.f32.vlgmr.msra.gmra.mxu2 %v1350_v30 }
 0x12c   : > { %v785_v43 = vpop.f32.mrf.mxu1 }
 0x137   : > { %v788_v25 = vpop.f32.mrf.mxu3 }
 0x17a   : > { %v808_v53 = vpop.f32.mrf.mxu0 }
 0x17b   : > { %v809_v44 = vadd.f32 %v808_v53, %v785_v43 }
 0x17d   : > { %v818_v54 = vadd.f32 %v1119_v52, %v809_v44 }
 0x17f   : > { %820 = vst [vmem:[%s345_s21] sm:$0xff] %v818_v54 }
 0x180   : > { %v811_v30 = vpop.f32.mrf.mxu2 }
 0x181   : > { %v812_v55 = vadd.f32 %v811_v30, %v788_v25 }
 0x183   : > { %v819_v56 = vadd.f32 %v1119_v52, %v812_v55 }
 0x185   : > { %821 = vst [vmem:[%s345_s21 + $0x8] sm:$0xff] %v819_v56 }
 0x186   : > { %1147 = shalt.err (!%p1144_p6)
}
 0x187   : > { %s1202_s8 = smov 128   ;;  %s1203_s19 = smov 256  }
 0x188   : > { %s1204_s20 = smov 8  }
 0x189   : > { %1038 = dma.vmem_to_hbm [thread:$0]  (%p1285_p4), %s838_s22, 256, %s840_s23, %s823_s27, %s1202_s8, %s1203_s19, %s1204_s20  }
 0x18a PF: > { %p1044_p7 = scmp.ge.s32.totalorder %s1198_s29, 2  ;;  %s854_s21 = sand.u32 1, %s1178_s24  }
 0x18b   : > { %s855_s16 = scalar_lea.sflag [#allocation4], %s854_s21 }
 0x18c   : > { %p1041_p9 = pnand %p1044_p7, %p1292_p8 }
 0x18e   : > { %p1042_p10 = pneg %p1041_p9 }
 0x190   : > { %1173 = dma.done.wait (%p1042_p10), %s855_s16, 256  }
 0x191   : > { %1175 = vsyncadd (%p1042_p10), %s855_s16, 4294967040  ;;  %s20_s29 = sadd.s32 1, %s1198_s29   ;;  %s1540_s24 = smov %s1182_s25 }
 0x192   : > { %p17_p11 = scmp.ge.s32.totalorder %s20_s29, 4   ;;  %s1541_s25 = smov %s1186_s26 }
 0x193   : > { %s1542_s26 = smov %s1298_s14  ;;  %s1543_s27 = smov %s1194_s28 }
 0x194   : > { %s1544_s28 = smov %s1546_s9  ;;  %19 = sbr.rel (!%p17_p11) target bundleno = 4 (0x4), region = 99 }
 0x199   :  { %861 = vsyncpa [#allocation4], 1 }
 0x19a   :  { %863 = vsyncpa [#allocation4 + $0x1], 1 }

// kernel: tpu_custom_call.1
= control target key start
LH: loop header
LB: loop body
LE: loop exit
PB: predicated region body
PF: predicated region fallthrough
CT: control target
= control target key end

     0   :  { %12 = vsyncpa [#allocation4], 0  ;;  %s1519_s0 = inlined_call_operand.vmem [shape: f32[16,128], index: 0, kind: input, shape index: {}]   ;;  %s1520_s1 = inlined_call_operand.vmem [shape: f32[256,128], index: 1, kind: input, shape index: {}]   ;;  %s1521_s2 = inlined_call_operand.vmem [shape: f32[4,128], index: 2, kind: input, shape index: {}]   ;;  %s1522_s3 = inlined_call_operand.vmem [shape: f32[256,4], index: 3, kind: input, shape index: {}]   ;;  %s1523_s4 = inlined_call_operand.vmem [shape: f32[2,128], index: 4, kind: input, shape index: {}]   ;;  %s1524_s5 = inlined_call_operand.vmem [shape: f32[256,2], index: 5, kind: input, shape index: {}]   ;;  %s1525_s6 = inlined_call_operand.vmem [shape: f32[1,256], index: 6, kind: input, shape index: {}]   ;;  %s1526_s7 = inlined_call_operand.hbm [shape: f32[16,256], index: 7, kind: output, shape index: {}]  }
   0x1   :  { %14 = vsyncpa [#allocation4 + $0x1], 0  ;;  %s1234_s24 = smov 0   ;;  %s1236_s25 = smov 0  }
   0x2   :  { %s1238_s26 = smov 0   ;;  %s1240_s27 = smov 0  }
   0x3   :  { %s1242_s28 = smov 0   ;;  %s1244_s29 = smov 0  }
   0x4 LB: > { %s960_s30 = sadd.s32 4294967295, %s1187_s29   ;;  %s961_s8 = sadd.s32 4294967294, %s1187_s29   ;;  %s1187_s29 = sphi %s1244_s29, %s20_s29   ;;  %s1183_s28 = sphi %s1242_s28, %s1533_s28   ;;  %s1179_s27 = sphi %s1240_s27, %s1532_s27   ;;  %s1175_s26 = sphi %s1238_s26, %s1531_s26   ;;  %s1171_s25 = sphi %s1236_s25, %s1530_s25   ;;  %s1167_s24 = sphi %s1234_s24, %s1529_s24  }
   0x5   : > { %s32_s9 = sadd.s32 1, %s1183_s28  ;;  %s213_s10 = sadd.s32 1, %s1175_s26 }
   0x6   : > { %p34_p0 = scmp.ge.s32.totalorder %s32_s9, 2  ;;  %p223_p1 = scmp.ne.s32.totalorder %s1175_s26, %s1171_s25 }
   0x7   : > { %p224_p2 = scmp.eq.s32.totalorder %s960_s30, 1  ;;  %p229_p3 = scmp.ne.s32.totalorder %s1171_s25, %s1167_s24 }
   0x8   : > { %s1535_s9 = smov (%p34_p0, %s32_s9), 0  ;;  %p230_p5 = scmp.eq.s32.totalorder %s961_s8, 1 }
   0x9   : > { %p1274_p4 = por %p224_p2, %p223_p1  ;;  %s209_s12 = ssub.s32 %s1183_s28, %s1535_s9 }
   0xa   : > { %p965_p6 = scmp.ge.s32.totalorder %s1187_s29, 1  ;;  %p211_p7 = scmp.eq.s32.totalorder %s209_s12, 0 }
   0xb   : > { %p1281_p8 = por %p230_p5, %p229_p3  ;;  %p296_p9 = scmp.lt.s32.totalorder %s1187_s29, 3 }
   0xc   : > { %s1287_s14 = scalar_select %p211_p7, %s1175_s26, %s213_s10  }
   0xd   : > { %p297_p10 = pnand %p965_p6, %p296_p9 }
   0xe   : > { %s967_s15 = sshll.u32 (!%p297_p10), %s1179_s27, 4  ;;  %p370_p12 = scmp.lt.s32.totalorder (!%p297_p10), %s1179_s27, 1 }
   0xf   : > { %300 = sbr.rel (%p297_p10) target bundleno = 394 (0x18a), region = 48  ;;  %p353_p11 = scmp.lt.s32.totalorder (!%p297_p10), %s967_s15, 31 }
  0x10   : > { %s343_s8 = sand.u32 (!%p297_p10), 1, %s1171_s25   ;;  %s992_s17 = sshll.u32 (!%p297_p10), %s1179_s27, 3 }
  0x11   : > { %s966_s10 = sshll.u32 (!%p297_p10), %s343_s8, 4  ;;  %s836_s20 = scalar_lea.hbm (!%p297_p10), %s1526_s7, %s992_s17 }
  0x12   : > { %s839_s23 = sshll.u32 (!%p297_p10), %s836_s20, 4  ;;  %s840_s23 = int_to_ptr.hbm [resolvable:$true] %s839_s23 }
  0x14   : > { %v1189_v0 = vmov 0   ;;  %s1537_s15 = smov (!%p353_p11, %s967_s15), 31  ;;  %v1190_v7 = vmov 1   ;;  %v671_v24 = vld [vmem:[%s1521_s2] sm:$0xf]  ;;  %v1339_v30 = vld [vmem:[%s1519_s0 + $0x8] sm:$0xff] }
  0x15   : > { %1089 = vset.pattern.permute.xlu1 %v1189_v0  ;;  %1087 = vset.pattern.permute.xlu0 %v1189_v0  ;;  %s1293_s16 = sshll.u32 %s1537_s15, 3  ;;  %v1329_v25 = vld [vmem:[%s1519_s0] sm:$0xff]  ;;  %vm713_vm0 = vcmask 31744   ;;  %s1129_s15 = scalar_lea.hbm %s1526_s7, 32 }
  0x16   : > { %1091 = vset.pattern.permute.xlu2 %v1189_v0  ;;  %s1299_s19 = scalar_lea.vmem %s1524_s5, %s1293_s16  ;;  %687 = vmatpush.xpose.msra.mxu0 %v671_v24  ;;  %v410_v42 = vld [vmem:[%s1523_s4] sm:$0x3]  ;;  %s1357_s18 = scalar_lea.vmem %s1522_s3, %s1293_s16 }
  0x17   : > { %v393_v1 = vld [vmem:[%s1299_s19 + $0x78] sm:$0xff]  ;;  %v392_v2 = vld [vmem:[%s1299_s19 + $0x70] sm:$0xff]  ;;  %v391_v5 = vld [vmem:[%s1299_s19 + $0x68] sm:$0xff]  ;;  %v1359_v43 = vperm.slane %v410_v42, 0  ;;  %v1361_v44 = vperm.slane %v410_v42, 1  ;;  %s1371_s21 = scalar_lea.vmem %s1520_s1, %s1293_s16 }
  0x18   : > { %v409_v3 = vmul.f32 0.5, %v393_v1  ;;  %v408_v4 = vmul.f32 0.5, %v392_v2  ;;  %v407_v6 = vmul.f32 0.5, %v391_v5  ;;  %v387_v8 = vld [vmem:[%s1299_s19 + $0x48] sm:$0xff]  ;;  %v390_v9 = vld [vmem:[%s1299_s19 + $0x60] sm:$0xff]  ;;  %v389_v12 = vld [vmem:[%s1299_s19 + $0x58] sm:$0xff] }
  0x19   : > { %v403_v10 = vmul.f32 0.5, %v387_v8  ;;  %v406_v11 = vmul.f32 0.5, %v390_v9  ;;  %v405_v13 = vmul.f32 0.5, %v389_v12  ;;  %v388_v14 = vld [vmem:[%s1299_s19 + $0x50] sm:$0xff]  ;;  %v382_v18 = vld [vmem:[%s1299_s19 + $0x20] sm:$0xff]  ;;  %v385_v22 = vld [vmem:[%s1299_s19 + $0x38] sm:$0xff]  ;;  %688 = vmatmul.f32.vlgmr.msra.gmra.mxu0 %v1329_v25 }
  0x1a   : > { %488 = vperm.xlu0 %1087, %v409_v3   ;;  %483 = vperm.xlu1 %1089, %v408_v4   ;;  %v404_v15 = vmul.f32 0.5, %v388_v14  ;;  %v384_v16 = vld [vmem:[%s1299_s19 + $0x30] sm:$0xff]  ;;  %v386_v19 = vld [vmem:[%s1299_s19 + $0x40] sm:$0xff]  ;;  %v398_v20 = vmul.f32 0.5, %v382_v18  ;;  %v401_v23 = vmul.f32 0.5, %v385_v22  ;;  %v383_v26 = vld [vmem:[%s1299_s19 + $0x28] sm:$0xff] }
  0x1b   : > { %478 = vperm.xlu2 %1091, %v407_v6   ;;  %v400_v17 = vmul.f32 0.5, %v384_v16  ;;  %v402_v21 = vmul.f32 0.5, %v386_v19  ;;  %v399_v27 = vmul.f32 0.5, %v383_v26  ;;  %v379_v28 = vld [vmem:[%s1299_s19 + $0x8] sm:$0xff]  ;;  %v381_v31 = vld [vmem:[%s1299_s19 + $0x18] sm:$0xff]  ;;  %v380_v33 = vld [vmem:[%s1299_s19 + $0x10] sm:$0xff] }
  0x1c   : > { %v395_v29 = vmul.f32 0.5, %v379_v28  ;;  %v397_v32 = vmul.f32 0.5, %v381_v31  ;;  %v396_v34 = vmul.f32 0.5, %v380_v33  ;;  %v378_v35 = vld [vmem:[%s1299_s19] sm:$0xff]  ;;  %v712_v45 = vld [vmem:[%s1357_s18 + $0x78] sm:$0xff]  ;;  %v711_v56 = vld [vmem:[%s1357_s18 + $0x70] sm:$0xff] }
  0x1d   : > { %v394_v36 = vmul.f32 0.5, %v378_v35  ;;  %973 = vmatpush.xpose.msk.msra.mxu1 %vm713_vm0, %v712_v45  ;;  %995 = vmatpush.xpose.msk.msra.mxu3 %vm713_vm0, %v712_v45  ;;  %v620_v51 = vld [vmem:[%s1371_s21 + $0x78] sm:$0xff]  ;;  %v619_v60 = vld [vmem:[%s1371_s21 + $0x70] sm:$0xff]  ;;  %v710_v61 = vld [vmem:[%s1357_s18 + $0x68] sm:$0xff]  ;;  %s1457_s16 = scalar_select %p370_p12, %s1179_s27, 1 }
  0x1e   : > { %v709_v5 = vld [vmem:[%s1357_s18 + $0x60] sm:$0xff]  ;;  %v616_v16 = vld [vmem:[%s1371_s21 + $0x58] sm:$0xff]  ;;  %v615_v28 = vld [vmem:[%s1371_s21 + $0x50] sm:$0xff]  ;;  %s823_s27 = scalar_lea.sflag [#allocation4], %s343_s8 }
  0x1f   : > { %v617_v9 = vld [vmem:[%s1371_s21 + $0x60] sm:$0xff]  ;;  %v614_v35 = vld [vmem:[%s1371_s21 + $0x48] sm:$0xff]  ;;  %s372_s30 = scalar_lea.vmem %s1525_s6, %s1457_s16  ;;  %s1123_s16 = sshra.s32 %s840_s23, 4  ;;  %s1124_s16 = int_to_ptr.hbm [resolvable:$true] %s1123_s16 }
  0x20   : > { %v613_v42 = vld [vmem:[%s1371_s21 + $0x40] sm:$0xff]  ;;  %p1130_p2 = scmp.lt.s32.totalorder %s1124_s16, %s1526_s7 }
  0x21   : > { %691 = vmatmul.f32.gmra.mxu0 %v1339_v30  ;;  %974 = vmatpush.xpose.msk.msra.mxu1 %vm713_vm0, %v711_v56 }
  0x22   : > { %1088 = vset.pattern.permute.xlu0 %v1190_v7  ;;  %1090 = vset.pattern.permute.xlu1 %v1190_v7 }
  0x23   : > { %569 = vperm.xlu0 %1088, %v409_v3   ;;  %565 = vperm.xlu1 %1090, %v408_v4   ;;  %v618_v4 = vld [vmem:[%s1371_s21 + $0x68] sm:$0xff] }
  0x24   : > { %1092 = vset.pattern.permute.xlu2 %v1190_v7  ;;  %996 = vmatpush.xpose.msk.msra.mxu3 %vm713_vm0, %v711_v56  ;;  %v700_v56 = vld [vmem:[%s1357_s18 + $0x18] sm:$0xff] }
  0x25   : > { %561 = vperm.xlu2 %1092, %v407_v6   ;;  %975 = vmatpush.xpose.msk.msra.mxu1 %vm713_vm0, %v710_v61 }
  0x28   : > { %997 = vmatpush.xpose.msk.msra.mxu3 %vm713_vm0, %v710_v61 }
  0x29   : > { %976 = vmatpush.xpose.msk.msra.mxu1 %vm713_vm0, %v709_v5 }
  0x2b   : > { %1093 = vset.pattern.permute.xlu1 %v1189_v0  ;;  %545 = vperm.xlu0 %1088, %v403_v10  }
  0x2c   : > { %473 = vperm.xlu1 %1093, %v406_v11   ;;  %998 = vmatpush.xpose.msk.msra.mxu3 %vm713_vm0, %v709_v5 }
  0x2d   : > { %557 = vperm.xlu2 %1092, %v406_v11  }
  0x33   : > { %1096 = vset.pattern.permute.xlu0 %v1189_v0 }
  0x34   : > { %1094 = vset.pattern.permute.xlu1 %v1190_v7  ;;  %468 = vperm.xlu0 %1096, %v405_v13  }
  0x35   : > { %553 = vperm.xlu1 %1094, %v405_v13   ;;  %1095 = vset.pattern.permute.xlu2 %v1189_v0 }
  0x36   : > { %463 = vperm.xlu2 %1095, %v404_v15  }
  0x3c   : > { %443 = vperm.xlu0 %1096, %v400_v17  }
  0x3d   : > { %549 = vperm.xlu1 %1094, %v404_v15  }
  0x3e   : > { %458 = vperm.xlu2 %1095, %v403_v10   ;;  %v708_v10 = vld [vmem:[%s1357_s18 + $0x58] sm:$0xff] }
  0x3f   : > { %977 = vmatpush.xpose.msk.msra.mxu1 %vm713_vm0, %v708_v10  ;;  %999 = vmatpush.xpose.msk.msra.mxu3 %vm713_vm0, %v708_v10  ;;  %v697_v10 = vld [vmem:[%s1357_s18] sm:$0xff] }
  0x44   : > { %1101 = vset.pattern.permute.xlu0 %v1190_v7 }
  0x45   : > { %1097 = vset.pattern.permute.xlu1 %v1189_v0  ;;  %525 = vperm.xlu0 %1101, %v398_v20  }
  0x46   : > { %453 = vperm.xlu1 %1097, %v402_v21   ;;  %1098 = vset.pattern.permute.xlu2 %v1190_v7 }
  0x47   : > { %541 = vperm.xlu2 %1098, %v402_v21   ;;  %v706_v21 = vld [vmem:[%s1357_s18 + $0x48] sm:$0xff] }
  0x4d   : > { %1104 = vset.pattern.permute.xlu0 %v1189_v0 }
  0x4e   : > { %448 = vperm.xlu1 %1097, %v401_v23   ;;  %418 = vperm.xlu0 %1104, %v395_v29  }
  0x4f   : > { %537 = vperm.xlu2 %1098, %v401_v23  }
  0x56   : > { %1099 = vset.pattern.permute.xlu1 %v1190_v7  ;;  %1107 = vset.pattern.permute.xlu0 %v1190_v7 }
  0x57   : > { %533 = vperm.xlu1 %1099, %v400_v17   ;;  %1100 = vset.pattern.permute.xlu2 %v1189_v0  ;;  %v707_v17 = vld [vmem:[%s1357_s18 + $0x50] sm:$0xff] }
  0x58   : > { %438 = vperm.xlu2 %1100, %v399_v27   ;;  %978 = vmatpush.xpose.msk.msra.mxu1 %vm713_vm0, %v707_v17 }
  0x59   : > { %1000 = vmatpush.xpose.msk.msra.mxu3 %vm713_vm0, %v707_v17  ;;  %v609_v17 = vld [vmem:[%s1371_s21 + $0x20] sm:$0xff] }
  0x5c   : > { %979 = vmatpush.xpose.msk.msra.mxu1 %vm713_vm0, %v706_v21 }
  0x5d   : > { %1001 = vmatpush.xpose.msk.msra.mxu3 %vm713_vm0, %v706_v21 }
  0x5f   : > { %529 = vperm.xlu1 %1099, %v399_v27  }
  0x60   : > { %433 = vperm.xlu2 %1100, %v398_v20  }
  0x67   : > { %1102 = vset.pattern.permute.xlu1 %v1189_v0 }
  0x68   : > { %428 = vperm.xlu1 %1102, %v397_v32   ;;  %1103 = vset.pattern.permute.xlu2 %v1190_v7 }
  0x69   : > { %521 = vperm.xlu2 %1103, %v397_v32  }
  0x70   : > { %423 = vperm.xlu1 %1102, %v396_v34  }
  0x71   : > { %517 = vperm.xlu2 %1103, %v396_v34   ;;  %v704_v34 = vld [vmem:[%s1357_s18 + $0x38] sm:$0xff] }
  0x75   : > { %v479_v37 = vpop.permute.xlu2 %478 }
  0x76   : > { %v505_v55 = vmul.f32 %v1359_v43, %v479_v37 }
  0x78   : > { %1105 = vset.pattern.permute.xlu1 %v1190_v7 }
  0x79   : > { %513 = vperm.xlu1 %1105, %v395_v29   ;;  %1106 = vset.pattern.permute.xlu2 %v1189_v0  ;;  %v705_v29 = vld [vmem:[%s1357_s18 + $0x40] sm:$0xff] }
  0x7a   : > { %413 = vperm.xlu2 %1106, %v394_v36   ;;  %980 = vmatpush.xpose.msk.msra.mxu1 %vm713_vm0, %v705_v29 }
  0x7b   : > { %1002 = vmatpush.xpose.msk.msra.mxu3 %vm713_vm0, %v705_v29 }
  0x7e   : > { %981 = vmatpush.xpose.msk.msra.mxu1 %vm713_vm0, %v704_v34 }
  0x7f   : > { %v562_v38 = vpop.permute.xlu2 %561  ;;  %1003 = vmatpush.xpose.msk.msra.mxu3 %vm713_vm0, %v704_v34 }
  0x80   : > { %v586_v58 = vmul.f32 %v1361_v44, %v562_v38 }
  0x81   : > { %509 = vperm.xlu1 %1105, %v394_v36  }
  0x82   : > { %v602_v63 = vadd.f32 %v586_v58, %v505_v55 }
  0x84   : > { %v634_v7 = vmul.f32 %v618_v4, %v602_v63  ;;  %v611_v63 = vld [vmem:[%s1371_s21 + $0x30] sm:$0xff] }
  0x87   : > { %v558_v41 = vpop.permute.xlu2 %557 }
  0x88   : > { %v585_v0 = vmul.f32 %v1361_v44, %v558_v41  ;;  %v703_v41 = vld [vmem:[%s1357_s18 + $0x30] sm:$0xff] }
  0x89   : > { %982 = vmatpush.xpose.msk.msra.mxu1 %vm713_vm0, %v703_v41  ;;  %1004 = vmatpush.xpose.msk.msra.mxu3 %vm713_vm0, %v703_v41 }
  0x8c   : > { %v484_v39 = vpop.permute.xlu1 %483  ;;  %v489_v40 = vpop.permute.xlu0 %488 }
  0x8d   : > { %v507_v46 = vmul.f32 %v1359_v43, %v489_v40  ;;  %v506_v52 = vmul.f32 %v1359_v43, %v484_v39 }
  0x90   : > { %v464_v54 = vpop.permute.xlu2 %463 }
  0x91   : > { %v502_v22 = vmul.f32 %v1359_v43, %v464_v54 }
  0x95   : > { %v570_v47 = vpop.permute.xlu0 %569  ;;  %v566_v48 = vpop.permute.xlu1 %565 }
  0x96   : > { %v588_v49 = vmul.f32 %v1361_v44, %v570_v47  ;;  %v587_v50 = vmul.f32 %v1361_v44, %v566_v48  ;;  %v702_v47 = vld [vmem:[%s1357_s18 + $0x28] sm:$0xff] }
  0x97   : > { %983 = vmatpush.xpose.msk.msra.mxu1 %vm713_vm0, %v702_v47  ;;  %1005 = vmatpush.xpose.msk.msra.mxu3 %vm713_vm0, %v702_v47 }
  0x98   : > { %v604_v53 = vadd.f32 %v588_v49, %v507_v46  ;;  %v603_v57 = vadd.f32 %v587_v50, %v506_v52  ;;  %v459_v8 = vpop.permute.xlu2 %458  ;;  %v701_v52 = vld [vmem:[%s1357_s18 + $0x20] sm:$0xff] }
  0x99   : > { %v501_v27 = vmul.f32 %v1359_v43, %v459_v8 }
  0x9a   : > { %v636_v59 = vmul.f32 %v620_v51, %v604_v53  ;;  %v635_v2 = vmul.f32 %v619_v60, %v603_v57  ;;  %v612_v53 = vld [vmem:[%s1371_s21 + $0x38] sm:$0xff] }
  0x9b   : > { %984 = vmatpush.xpose.msk.msra.mxu1 %vm713_vm0, %v701_v52  ;;  %1006 = vmatpush.xpose.msk.msra.mxu3 %vm713_vm0, %v701_v52  ;;  %v1108_v52 = vld [vmem:[%s372_s30] ss:$0 sm:$0xff]  ;;  %s1125_s30 = scalar_lea.hbm %s1124_s16, 16 }
  0x9c   : > { %791 = vmatpush.xpose.msrb.mxu0 %v636_v59  ;;  %1011 = vmatpush.xpose.msra.mxu2 %v636_v59  ;;  %v699_v59 = vld [vmem:[%s1357_s18 + $0x10] sm:$0xff]  ;;  %p1126_p13 = scmp.ne.s32.totalorder %s1124_s16, %s1125_s30  ;;  %p1131_p3 = scmp.lt.s32.totalorder %s1129_s15, %s1125_s30 }
  0x9d   : > { %v546_v62 = vpop.permute.xlu0 %545 }
  0x9e   : > { %v474_v1 = vpop.permute.xlu1 %473  ;;  %v582_v24 = vmul.f32 %v1361_v44, %v546_v62  ;;  %p1127_p0 = pnand %p1126_p13, %p1274_p4  ;;  %p1132_p5 = por %p1131_p3, %p1130_p2 }
  0x9f   : > { %v504_v3 = vmul.f32 %v1359_v43, %v474_v1  ;;  %985 = vmatpush.xpose.msk.msra.mxu1 %vm713_vm0, %v700_v56  ;;  %1007 = vmatpush.xpose.msk.msra.mxu3 %vm713_vm0, %v700_v56 }
  0xa0   : > { %792 = vmatpush.xpose.msrb.mxu0 %v635_v2  ;;  %1012 = vmatpush.xpose.msra.mxu2 %v635_v2  ;;  %v598_v32 = vadd.f32 %v582_v24, %v501_v27  ;;  %v698_v2 = vld [vmem:[%s1357_s18 + $0x8] sm:$0xff]  ;;  %v608_v24 = vld [vmem:[%s1371_s21 + $0x18] sm:$0xff]  ;;  %p1128_p1 = pneg %p1127_p0 }
  0xa1   : > { %v601_v6 = vadd.f32 %v585_v0, %v504_v3  ;;  %v542_v20 = vpop.permute.xlu2 %541 }
  0xa2   : > { %v581_v37 = vmul.f32 %v1361_v44, %v542_v20  ;;  %v630_v39 = vmul.f32 %v614_v35, %v598_v32  ;;  %p1133_p6 = pnand %p1132_p5, %p1128_p1 }
  0xa3   : > { %v633_v12 = vmul.f32 %v617_v9, %v601_v6  ;;  %986 = vmatpush.xpose.msk.msra.mxu1 %vm713_vm0, %v699_v59  ;;  %1008 = vmatpush.xpose.msk.msra.mxu3 %vm713_vm0, %v699_v59  ;;  %v689_v6 = vpop.f32.mrf.mxu0 }
  0xa4   : > { %793 = vmatpush.xpose.msrb.mxu0 %v634_v7  ;;  %1013 = vmatpush.xpose.msra.mxu2 %v634_v7 }
  0xa6   : > { %v469_v11 = vpop.permute.xlu0 %468 }
  0xa7   : > { %v554_v13 = vpop.permute.xlu1 %553  ;;  %v503_v14 = vmul.f32 %v1359_v43, %v469_v11  ;;  %987 = vmatpush.xpose.msk.msra.mxu1 %vm713_vm0, %v698_v2  ;;  %1009 = vmatpush.xpose.msk.msra.mxu3 %vm713_vm0, %v698_v2  ;;  %v610_v11 = vld [vmem:[%s1371_s21 + $0x28] sm:$0xff] }
  0xa8   : > { %v584_v15 = vmul.f32 %v1361_v44, %v554_v13  ;;  %794 = vmatpush.xpose.msrb.mxu0 %v633_v12  ;;  %1014 = vmatpush.xpose.msra.mxu2 %v633_v12 }
  0xa9   : > { %v538_v36 = vpop.permute.xlu2 %537 }
  0xaa   : > { %v600_v18 = vadd.f32 %v584_v15, %v503_v14  ;;  %v580_v48 = vmul.f32 %v1361_v44, %v538_v36  ;;  %v695_v14 = vmul.f32 0.25, %v689_v6 }
  0xab   : > { %988 = vmatpush.xpose.msk.msra.mxu1 %vm713_vm0, %v697_v10  ;;  %1010 = vmatpush.xpose.msk.msra.mxu3 %vm713_vm0, %v697_v10 }
  0xac   : > { %v632_v19 = vmul.f32 %v616_v16, %v600_v18 }
  0xae   : > { %795 = vmatpush.xpose.msrb.mxu0 %v632_v19  ;;  %1015 = vmatpush.xpose.msra.mxu2 %v632_v19  ;;  %v444_v57 = vpop.permute.xlu0 %443  ;;  %v692_v19 = vpop.f32.mrf.mxu0 }
  0xaf   : > { %v550_v23 = vpop.permute.xlu1 %549  ;;  %v498_v60 = vmul.f32 %v1359_v43, %v444_v57  ;;  %989 = vmatmul.msk.f32.vlgmr.msra.gmra.mxu1 %vm713_vm0, %v695_v14 }
  0xb0   : > { %v583_v26 = vmul.f32 %v1361_v44, %v550_v23 }
  0xb2   : > { %v599_v31 = vadd.f32 %v583_v26, %v502_v22  ;;  %v439_v50 = vpop.permute.xlu2 %438  ;;  %v696_v22 = vmul.f32 0.25, %v692_v19 }
  0xb3   : > { %v497_v4 = vmul.f32 %v1359_v43, %v439_v50 }
  0xb4   : > { %v631_v33 = vmul.f32 %v615_v28, %v599_v31  ;;  %990 = vmatmul.msk.f32.vlgmr.msra.gmra.mxu3 %vm713_vm0, %v696_v22 }
  0xb6   : > { %796 = vmatpush.xpose.msrb.mxu0 %v631_v33  ;;  %1016 = vmatpush.xpose.msra.mxu2 %v631_v33  ;;  %v607_v33 = vld [vmem:[%s1371_s21 + $0x10] sm:$0xff] }
  0xb7   : > { %v526_v3 = vpop.permute.xlu0 %525 }
  0xb8   : > { %v454_v38 = vpop.permute.xlu1 %453  ;;  %v577_v8 = vmul.f32 %v1361_v44, %v526_v3 }
  0xb9   : > { %v500_v40 = vmul.f32 %v1359_v43, %v454_v38 }
  0xba   : > { %797 = vmatpush.xpose.msrb.mxu0 %v630_v39  ;;  %1017 = vmatpush.xpose.msra.mxu2 %v630_v39  ;;  %v434_v62 = vpop.permute.xlu2 %433 }
  0xbb   : > { %v597_v45 = vadd.f32 %v581_v37, %v500_v40  ;;  %v496_v9 = vmul.f32 %v1359_v43, %v434_v62  ;;  %v606_v40 = vld [vmem:[%s1371_s21 + $0x8] sm:$0xff] }
  0xbd   : > { %v629_v46 = vmul.f32 %v613_v42, %v597_v45  ;;  %v593_v15 = vadd.f32 %v577_v8, %v496_v9 }
  0xbf   : > { %798 = vmatpush.xpose.msrb.mxu0 %v629_v46  ;;  %1018 = vmatpush.xpose.msra.mxu2 %v629_v46  ;;  %v625_v21 = vmul.f32 %v609_v17, %v593_v15 }
  0xc0   : > { %v449_v49 = vpop.permute.xlu1 %448  ;;  %v419_v36 = vpop.permute.xlu0 %418 }
  0xc1   : > { %v499_v51 = vmul.f32 %v1359_v43, %v449_v49  ;;  %v493_v37 = vmul.f32 %v1359_v43, %v419_v36  ;;  %v605_v49 = vld [vmem:[%s1371_s21] sm:$0xff]  ;;  %s345_s21 = scalar_lea.vmem [#allocation3], %s966_s10 }
  0xc2   : > { %s837_s22 = sshll.u32 %s345_s21, 4  ;;  %s838_s22 = int_to_ptr.vmem [resolvable:$true] %s837_s22 }
  0xc3   : > { %v596_v54 = vadd.f32 %v580_v48, %v499_v51  ;;  %v522_v13 = vpop.permute.xlu2 %521 }
  0xc4   : > { %v576_v18 = vmul.f32 %v1361_v44, %v522_v13 }
  0xc5   : > { %v628_v55 = vmul.f32 %v612_v53, %v596_v54 }
  0xc7   : > { %799 = vmatpush.xpose.msrb.mxu0 %v628_v55  ;;  %1019 = vmatpush.xpose.msra.mxu2 %v628_v55 }
  0xc9   : > { %v534_v58 = vpop.permute.xlu1 %533 }
  0xca   : > { %v579_v61 = vmul.f32 %v1361_v44, %v534_v58 }
  0xcb   : > { %v518_v27 = vpop.permute.xlu2 %517 }
  0xcc   : > { %v595_v0 = vadd.f32 %v579_v61, %v498_v60  ;;  %v575_v29 = vmul.f32 %v1361_v44, %v518_v27 }
  0xce   : > { %v627_v1 = vmul.f32 %v611_v63, %v595_v0 }
  0xd0   : > { %800 = vmatpush.xpose.msrb.mxu0 %v627_v1  ;;  %1020 = vmatpush.xpose.msra.mxu2 %v627_v1 }
  0xd1   : > { %v530_v5 = vpop.permute.xlu1 %529 }
  0xd2   : > { %v578_v7 = vmul.f32 %v1361_v44, %v530_v5 }
  0xd4   : > { %v594_v12 = vadd.f32 %v578_v7, %v497_v4  ;;  %v414_v42 = vpop.permute.xlu2 %413 }
  0xd5   : > { %v492_v46 = vmul.f32 %v1359_v43, %v414_v42 }
  0xd6   : > { %v626_v16 = vmul.f32 %v610_v11, %v594_v12 }
  0xd8   : > { %801 = vmatpush.xpose.msrb.mxu0 %v626_v16  ;;  %1021 = vmatpush.xpose.msra.mxu2 %v626_v16 }
  0xda   : > { %v429_v20 = vpop.permute.xlu1 %428 }
  0xdb   : > { %v495_v23 = vmul.f32 %v1359_v43, %v429_v20 }
  0xdc   : > { %802 = vmatpush.xpose.msrb.mxu0 %v625_v21  ;;  %1022 = vmatpush.xpose.msra.mxu2 %v625_v21 }
  0xdd   : > { %v592_v26 = vadd.f32 %v576_v18, %v495_v23 }
  0xdf   : > { %v624_v28 = vmul.f32 %v608_v24, %v592_v26 }
  0xe1   : > { %803 = vmatpush.xpose.msrb.mxu0 %v624_v28  ;;  %1023 = vmatpush.xpose.msra.mxu2 %v624_v28 }
  0xe2   : > { %v424_v31 = vpop.permute.xlu1 %423 }
  0xe3   : > { %v494_v32 = vmul.f32 %v1359_v43, %v424_v31 }
  0xe5   : > { %v591_v34 = vadd.f32 %v575_v29, %v494_v32 }
  0xe7   : > { %v623_v35 = vmul.f32 %v607_v33, %v591_v34 }
  0xe9   : > { %804 = vmatpush.xpose.msrb.mxu0 %v623_v35  ;;  %1024 = vmatpush.xpose.msra.mxu2 %v623_v35 }
  0xeb   : > { %v514_v38 = vpop.permute.xlu1 %513 }
  0xec   : > { %v574_v39 = vmul.f32 %v1361_v44, %v514_v38 }
  0xee   : > { %v590_v41 = vadd.f32 %v574_v39, %v493_v37 }
  0xf0   : > { %v622_v45 = vmul.f32 %v606_v40, %v590_v41 }
  0xf2   : > { %805 = vmatpush.xpose.msrb.mxu0 %v622_v45  ;;  %1025 = vmatpush.xpose.msra.mxu2 %v622_v45 }
  0xf3   : > { %v510_v47 = vpop.permute.xlu1 %509 }
  0xf4   : > { %v573_v48 = vmul.f32 %v1361_v44, %v510_v47 }
  0xf6   : > { %v589_v50 = vadd.f32 %v573_v48, %v492_v46 }
  0xf8   : > { %v621_v51 = vmul.f32 %v605_v49, %v589_v50 }
  0xfa   : > { %806 = vmatpush.xpose.msrb.mxu0 %v621_v51  ;;  %1026 = vmatpush.xpose.msra.mxu2 %v621_v51 }
  0xfd   : > { %807 = vmatmul.f32.vlgmr.msrb.gmra.mxu0 %v1329_v25  ;;  %810 = vmatmul.f32.vlgmr.msra.gmra.mxu2 %v1339_v30 }
 0x12c   : > { %v785_v43 = vpop.f32.mrf.mxu1 }
 0x137   : > { %v788_v25 = vpop.f32.mrf.mxu3 }
 0x17a   : > { %v808_v53 = vpop.f32.mrf.mxu0 }
 0x17b   : > { %v809_v44 = vadd.f32 %v808_v53, %v785_v43 }
 0x17d   : > { %v818_v54 = vadd.f32 %v1108_v52, %v809_v44 }
 0x17f   : > { %820 = vst [vmem:[%s345_s21] sm:$0xff] %v818_v54 }
 0x180   : > { %v811_v30 = vpop.f32.mrf.mxu2 }
 0x181   : > { %v812_v55 = vadd.f32 %v811_v30, %v788_v25 }
 0x183   : > { %v819_v56 = vadd.f32 %v1108_v52, %v812_v55 }
 0x185   : > { %821 = vst [vmem:[%s345_s21 + $0x8] sm:$0xff] %v819_v56 }
 0x186   : > { %1136 = shalt.err (!%p1133_p6)
}
 0x187   : > { %s1191_s8 = smov 128   ;;  %s1192_s19 = smov 256  }
 0x188   : > { %s1193_s20 = smov 8  }
 0x189   : > { %1027 = dma.vmem_to_hbm [thread:$0]  (%p1274_p4), %s838_s22, 256, %s840_s23, %s823_s27, %s1191_s8, %s1192_s19, %s1193_s20  }
 0x18a PF: > { %p1033_p7 = scmp.ge.s32.totalorder %s1187_s29, 2  ;;  %s854_s21 = sand.u32 1, %s1167_s24  }
 0x18b   : > { %s855_s16 = scalar_lea.sflag [#allocation4], %s854_s21 }
 0x18c   : > { %p1030_p9 = pnand %p1033_p7, %p1281_p8 }
 0x18e   : > { %p1031_p10 = pneg %p1030_p9 }
 0x190   : > { %1162 = dma.done.wait (%p1031_p10), %s855_s16, 256  }
 0x191   : > { %1164 = vsyncadd (%p1031_p10), %s855_s16, 4294967040  ;;  %s20_s29 = sadd.s32 1, %s1187_s29   ;;  %s1529_s24 = smov %s1171_s25 }
 0x192   : > { %p17_p11 = scmp.ge.s32.totalorder %s20_s29, 4   ;;  %s1530_s25 = smov %s1175_s26 }
 0x193   : > { %s1531_s26 = smov %s1287_s14  ;;  %s1532_s27 = smov %s1183_s28 }
 0x194   : > { %s1533_s28 = smov %s1535_s9  ;;  %19 = sbr.rel (!%p17_p11) target bundleno = 4 (0x4), region = 99 }
 0x199   :  { %861 = vsyncpa [#allocation4], 1 }
 0x19a   :  { %863 = vsyncpa [#allocation4 + $0x1], 1 }

</bundles_post_ra>
